<compile_context>
chip_gen: v7x
topology: tpu7x:2x2x1
jax: 0.10.0
libtpu: 0.0.40
codegen_flags: <defaults>
</compile_context>

<pallas_src>
import jax
import jax.numpy as jnp
from jax.experimental import pallas as pl
from jax.experimental.pallas import tpu as pltpu

LANE = 128  # every feature dimension is padded to the vreg lane width


# ---------------------------------------------------------------------------
# Fused Pallas kernel: all GIN layers + global_mean_pool + final MLP
# ---------------------------------------------------------------------------
def gin_fused_kernel(adj_ref, x_ref, w1_ref, b1_ref, w2_ref, b2_ref,
                     pool_ref, inv_cnt_ref, fw1_ref, fb1_ref, fw2_ref, fb2_ref,
                     o_ref):
    num_layers = w1_ref.shape[0]

    adj = adj_ref[...]          # (N_pad, N_pad) bf16 -- loaded once, reused by every layer
    x = x_ref[...]              # (N_pad, 128)  bf16

    for layer in range(num_layers):   # static unroll (num_layers is small & fixed)
        # GINConv(eps=0, train_eps=False): agg = (A + I) @ x  (identity already folded into A)
        agg = jnp.dot(adj, x, preferred_element_type=jnp.float32)
        # MLP([C, H, H]): Linear -> BatchNorm1d(eval, folded into w1/b1) -> ReLU -> Linear
        h = jnp.dot(agg.astype(jnp.bfloat16), w1_ref[layer],
                    preferred_element_type=jnp.float32) + b1_ref[layer]
        h = jnp.maximum(h, 0.0)
        h = jnp.dot(h.astype(jnp.bfloat16), w2_ref[layer],
                    preferred_element_type=jnp.float32) + b2_ref[layer]
        # outer conv(x, edge_index).relu()
        x = jnp.maximum(h, 0.0).astype(jnp.bfloat16)

    # global_mean_pool: exact 0/1 one-hot sum on the MXU (f32 accumulate), then f32 1/count scale.
    pooled = jnp.dot(pool_ref[...], x, preferred_element_type=jnp.float32)  # (G_pad, 128) f32
    pooled = pooled * inv_cnt_ref[...]                                       # f32 VPU scale

    # Final MLP([H, H, out], norm=None, dropout=0.4): Linear -> ReLU -> Dropout -> Linear
    h = jnp.dot(pooled.astype(jnp.bfloat16), fw1_ref[...],
                preferred_element_type=jnp.float32) + fb1_ref[...]
    h = jnp.maximum(h, 0.0)
    # TODO(synk): dropout(p=0.4) is identity in eval mode; training-mode stochastic dropout
    #             (pltpu.prng_seed / prng_random_bits) not implemented.
    o_ref[...] = jnp.dot(h.astype(jnp.bfloat16), fw2_ref[...],
                         preferred_element_type=jnp.float32) + fb2_ref[...]


def gin_forward(adj, x, w1, b1, w2, b2, pool, inv_cnt, fw1, fb1, fw2, fb2):
    """Single fused pallas_call; all operands are whole-array VMEM resident (small shapes)."""
    n_pad = adj.shape[0]
    num_layers = w1.shape[0]
    n_graphs_pad = pool.shape[0]
    out_pad = fw2.shape[1]
    args = (adj, x, w1, b1, w2, b2, pool, inv_cnt, fw1, fb1, fw2, fb2)

    # Advisory cost estimate: per-layer (A@x + 2 dense layers), pooling matmul, final 2 layers.
    flops = (num_layers * (2 * n_pad * n_pad * LANE + 2 * 2 * n_pad * LANE * LANE)
             + 2 * n_graphs_pad * n_pad * LANE
             + 2 * 2 * n_graphs_pad * LANE * LANE)
    bytes_accessed = (sum(int(a.size) * a.dtype.itemsize for a in args)
                      + n_graphs_pad * out_pad * 4)
    cost = pl.CostEstimate(flops=flops, transcendentals=0, bytes_accessed=bytes_accessed)

    return pl.pallas_call(
        gin_fused_kernel,
        out_shape=jax.ShapeDtypeStruct((n_graphs_pad, out_pad), jnp.float32),
        in_specs=[pl.BlockSpec(memory_space=pltpu.MemorySpace.VMEM)] * len(args),
        out_specs=pl.BlockSpec(memory_space=pltpu.MemorySpace.VMEM),
        cost_estimate=cost,
    )(*args)


# ---------------------------------------------------------------------------
# Parameter init (deterministic, synthetic) with BN fold + lane padding + bf16 cast
# ---------------------------------------------------------------------------
def _pad2(a, shape):
    return jnp.pad(a, [(0, t - s) for s, t in zip(a.shape, shape)])


def init_params(key, in_channels, hidden_channels, out_channels, num_layers):
    bn_eps = 1e-5
    w1s, b1s, w2s, b2s = [], [], [], []
    c_in = in_channels
    for _ in range(num_layers):
        key, k1, k2 = jax.random.split(key, 3)
        w1 = jax.random.normal(k1, (c_in, hidden_channels), jnp.float32) / jnp.sqrt(
            jnp.float32(c_in))
        b1 = jnp.zeros((1, hidden_channels), jnp.float32)
        # BatchNorm1d eval (weight=1, bias=0, running_mean=0, running_var=1) folded into w1/b1.
        scale = jnp.ones((hidden_channels,), jnp.float32) / jnp.sqrt(1.0 + bn_eps)
        shift = jnp.zeros((hidden_channels,), jnp.float32)
        w1 = w1 * scale[None, :]
        b1 = b1 * scale[None, :] + shift[None, :]
        w2 = jax.random.normal(k2, (hidden_channels, hidden_channels), jnp.float32) / jnp.sqrt(
            jnp.float32(hidden_channels))
        b2 = jnp.zeros((1, hidden_channels), jnp.float32)
        w1s.append(_pad2(w1, (LANE, LANE)))
        b1s.append(_pad2(b1, (1, LANE)))
        w2s.append(_pad2(w2, (LANE, LANE)))
        b2s.append(_pad2(b2, (1, LANE)))
        c_in = hidden_channels

    W1 = jnp.stack(w1s).astype(jnp.bfloat16)   # (L, 128, 128) bf16
    B1 = jnp.stack(b1s)                        # (L, 1, 128)  f32 (added to f32 accumulators)
    W2 = jnp.stack(w2s).astype(jnp.bfloat16)
    B2 = jnp.stack(b2s)

    key, k1, k2 = jax.random.split(key, 3)
    fw1 = jax.random.normal(k1, (hidden_channels, hidden_channels), jnp.float32) / jnp.sqrt(
        jnp.float32(hidden_channels))
    fb1 = jnp.zeros((1, hidden_channels), jnp.float32)
    fw2 = jax.random.normal(k2, (hidden_channels, out_channels), jnp.float32) / jnp.sqrt(
        jnp.float32(hidden_channels))
    fb2 = jnp.zeros((1, out_channels), jnp.float32)
    FW1 = _pad2(fw1, (LANE, LANE)).astype(jnp.bfloat16)
    FB1 = _pad2(fb1, (1, LANE))
    FW2 = _pad2(fw2, (LANE, LANE)).astype(jnp.bfloat16)
    FB2 = _pad2(fb2, (1, LANE))
    return (W1, B1, W2, B2), (FW1, FB1, FW2, FB2)


# ---------------------------------------------------------------------------
# Pure-JAX reference (identical math on the same padded/bf16 operands)
# ---------------------------------------------------------------------------
def reference_forward(adj, x, W1, B1, W2, B2, pool, inv_cnt, FW1, FB1, FW2, FB2):
    xf = x
    for l in range(W1.shape[0]):
        agg = jnp.dot(adj, xf, preferred_element_type=jnp.float32)
        h = jnp.dot(agg.astype(jnp.bfloat16), W1[l], preferred_element_type=jnp.float32) + B1[l]
        h = jnp.maximum(h, 0.0)
        h = jnp.dot(h.astype(jnp.bfloat16), W2[l], preferred_element_type=jnp.float32) + B2[l]
        xf = jnp.maximum(h, 0.0).astype(jnp.bfloat16)
    pooled = jnp.dot(pool, xf, preferred_element_type=jnp.float32) * inv_cnt
    h = jnp.maximum(
        jnp.dot(pooled.astype(jnp.bfloat16), FW1, preferred_element_type=jnp.float32) + FB1, 0.0)
    return jnp.dot(h.astype(jnp.bfloat16), FW2, preferred_element_type=jnp.float32) + FB2


# ---------------------------------------------------------------------------
# Main
# ---------------------------------------------------------------------------
if __name__ == "__main__":
    key = jax.random.PRNGKey(0)

    # Small synthetic graph batch (node count chosen > 128 so adj/pool are lane-dense after pad).
    num_nodes = 200
    node_pad = 256               # node dim padded to a multiple of 128 (lane-dense last dims)
    num_edges = 800
    in_channels = 8
    hidden_channels = 32
    out_channels = 8
    num_layers = 3
    num_graphs = 4
    num_graphs_pad = 8           # sublane-friendly padding of the pooled/output rows

    key, kx, ke = jax.random.split(key, 3)
    x = jax.random.normal(kx, (num_nodes, in_channels), jnp.float32)
    edge_index = jax.random.randint(ke, (2, num_edges), 0, num_nodes, dtype=jnp.int32)
    # Nodes evenly assigned to graphs: nodes [0..49]->g0, [50..99]->g1, ...
    batch = jnp.repeat(jnp.arange(num_graphs, dtype=jnp.int32), num_nodes // num_graphs)

    key, kp = jax.random.split(key)
    (W1, B1, W2, B2), (FW1, FB1, FW2, FB2) = init_params(
        kp, in_channels, hidden_channels, out_channels, num_layers)

    # --- Built ONCE per static graph batch (hoisted out of the forward path) -----------------
    src, dst = edge_index[0], edge_index[1]
    # Dense adjacency on the PADDED node count: A[i, j] = #edges j -> i ; plus identity on the
    # real nodes for the (1+eps)*x_i term (eps=0). Padded rows/cols stay zero, so padded nodes
    # never influence real ones. Small integer counts are exact in bf16.
    adj = jnp.zeros((node_pad, node_pad), jnp.float32).at[dst, src].add(1.0)
    node_ids = jnp.arange(num_nodes)
    adj = adj.at[node_ids, node_ids].add(1.0)
    adj = adj.astype(jnp.bfloat16)
    # Unnormalized one-hot pooling matrix (exact 0/1 in bf16), padded nodes match no graph.
    batch_pad = jnp.concatenate(
        [batch, jnp.full((node_pad - num_nodes,), -1, jnp.int32)])
    onehot = (jnp.arange(num_graphs_pad)[:, None] == batch_pad[None, :]).astype(jnp.float32)
    counts = onehot.sum(axis=1)                                     # (G_pad,)
    inv_cnt = (1.0 / jnp.maximum(counts, 1.0))[:, None]             # f32, exact-as-torch mean
    inv_cnt = jnp.broadcast_to(inv_cnt, (num_graphs_pad, LANE)).astype(jnp.float32)
    pool = onehot.astype(jnp.bfloat16)                              # (G_pad, N_pad) bf16
    # Zero-pad node features to (N_pad, 128) lanes.
    x_pad = _pad2(x, (node_pad, LANE)).astype(jnp.bfloat16)
    # ------------------------------------------------------------------------------------------

    fwd = jax.jit(gin_forward)
    out_pad = fwd(adj, x_pad, W1, B1, W2, B2, pool, inv_cnt, FW1, FB1, FW2, FB2)
    out_pad = jax.block_until_ready(out_pad)

    out = out_pad[:num_graphs, :out_channels]   # strip graph-row / feature-lane padding
    assert out.shape == (num_graphs, out_channels)
    assert bool(jnp.all(jnp.isfinite(out)))

    # Numerics check against an identical-math pure-JAX reference (loose: bf16 MXU rounding).
    ref = reference_forward(adj, x_pad, W1, B1, W2, B2, pool, inv_cnt,
                            FW1, FB1, FW2, FB2)[:num_graphs, :out_channels]
    assert bool(jnp.allclose(out, ref, rtol=5e-2, atol=5e-2))

    print("KERNEL_OK")
</pallas_src>

<mosaic_0001>
module attributes {stable_mosaic.version = 11 : i64} {
  func.func @gin_fused_kernel(%arg0: memref<256x256xbf16, #tpu.memory_space<vmem>>, %arg1: memref<256x128xbf16, #tpu.memory_space<vmem>>, %arg2: memref<3x128x128xbf16, #tpu.memory_space<vmem>>, %arg3: memref<3x1x128xf32, #tpu.memory_space<vmem>>, %arg4: memref<3x128x128xbf16, #tpu.memory_space<vmem>>, %arg5: memref<3x1x128xf32, #tpu.memory_space<vmem>>, %arg6: memref<8x256xbf16, #tpu.memory_space<vmem>>, %arg7: memref<8x128xf32, #tpu.memory_space<vmem>>, %arg8: memref<128x128xbf16, #tpu.memory_space<vmem>>, %arg9: memref<1x128xf32, #tpu.memory_space<vmem>>, %arg10: memref<128x128xbf16, #tpu.memory_space<vmem>>, %arg11: memref<1x128xf32, #tpu.memory_space<vmem>>, %arg12: memref<8x128xf32, #tpu.memory_space<vmem>>) attributes {dimension_semantics = [], scalar_prefetch = 0 : i64, scratch_operands = 0 : i64, tpu.core_type = #tpu.core_type<tc>} {
    %c0 = arith.constant 0 : index
    %c0_0 = arith.constant 0 : index
    %0 = vector.load %arg0[%c0, %c0_0] : memref<256x256xbf16, #tpu.memory_space<vmem>>, vector<256x256xbf16>
    %c0_1 = arith.constant 0 : index
    %c0_2 = arith.constant 0 : index
    %1 = vector.load %arg1[%c0_1, %c0_2] : memref<256x128xbf16, #tpu.memory_space<vmem>>, vector<256x128xbf16>
    %cst = arith.constant dense<0.000000e+00> : vector<256x128xf32>
    %2 = tpu.matmul %0, %1, %cst {dimension_numbers = #tpu.dot_dimension_numbers<[1], [0], [0], [1], [0, 0, 1, 1], [], []>} : vector<256x256xbf16>, vector<256x128xbf16>, vector<256x128xf32> -> vector<256x128xf32>
    %3 = arith.truncf %2 : vector<256x128xf32> to vector<256x128xbf16>
    %c0_3 = arith.constant 0 : index
    %c0_4 = arith.constant 0 : index
    %c0_5 = arith.constant 0 : index
    %4 = vector.load %arg2[%c0_3, %c0_4, %c0_5] : memref<3x128x128xbf16, #tpu.memory_space<vmem>>, vector<1x128x128xbf16>
    %5 = vector.shape_cast %4 : vector<1x128x128xbf16> to vector<128x128xbf16>
    %cst_6 = arith.constant dense<0.000000e+00> : vector<256x128xf32>
    %6 = tpu.matmul %3, %5, %cst_6 {dimension_numbers = #tpu.dot_dimension_numbers<[1], [0], [0], [1], [0, 0, 1, 1], [], []>} : vector<256x128xbf16>, vector<128x128xbf16>, vector<256x128xf32> -> vector<256x128xf32>
    %c0_7 = arith.constant 0 : index
    %c0_8 = arith.constant 0 : index
    %c0_9 = arith.constant 0 : index
    %7 = vector.load %arg3[%c0_7, %c0_8, %c0_9] : memref<3x1x128xf32, #tpu.memory_space<vmem>>, vector<1x1x128xf32>
    %8 = vector.shape_cast %7 : vector<1x1x128xf32> to vector<1x128xf32>
    %9 = vector.broadcast %8 : vector<1x128xf32> to vector<256x128xf32>
    %10 = arith.addf %6, %9 : vector<256x128xf32>
    %cst_10 = arith.constant 0.000000e+00 : f32
    %11 = vector.broadcast %cst_10 : f32 to vector<256x128xf32>
    %12 = arith.maximumf %10, %11 : vector<256x128xf32>
    %13 = arith.truncf %12 : vector<256x128xf32> to vector<256x128xbf16>
    %c0_11 = arith.constant 0 : index
    %c0_12 = arith.constant 0 : index
    %c0_13 = arith.constant 0 : index
    %14 = vector.load %arg4[%c0_11, %c0_12, %c0_13] : memref<3x128x128xbf16, #tpu.memory_space<vmem>>, vector<1x128x128xbf16>
    %15 = vector.shape_cast %14 : vector<1x128x128xbf16> to vector<128x128xbf16>
    %cst_14 = arith.constant dense<0.000000e+00> : vector<256x128xf32>
    %16 = tpu.matmul %13, %15, %cst_14 {dimension_numbers = #tpu.dot_dimension_numbers<[1], [0], [0], [1], [0, 0, 1, 1], [], []>} : vector<256x128xbf16>, vector<128x128xbf16>, vector<256x128xf32> -> vector<256x128xf32>
    %c0_15 = arith.constant 0 : index
    %c0_16 = arith.constant 0 : index
    %c0_17 = arith.constant 0 : index
    %17 = vector.load %arg5[%c0_15, %c0_16, %c0_17] : memref<3x1x128xf32, #tpu.memory_space<vmem>>, vector<1x1x128xf32>
    %18 = vector.shape_cast %17 : vector<1x1x128xf32> to vector<1x128xf32>
    %19 = vector.broadcast %18 : vector<1x128xf32> to vector<256x128xf32>
    %20 = arith.addf %16, %19 : vector<256x128xf32>
    %cst_18 = arith.constant 0.000000e+00 : f32
    %21 = vector.broadcast %cst_18 : f32 to vector<256x128xf32>
    %22 = arith.maximumf %20, %21 : vector<256x128xf32>
    %23 = arith.truncf %22 : vector<256x128xf32> to vector<256x128xbf16>
    %cst_19 = arith.constant dense<0.000000e+00> : vector<256x128xf32>
    %24 = tpu.matmul %0, %23, %cst_19 {dimension_numbers = #tpu.dot_dimension_numbers<[1], [0], [0], [1], [0, 0, 1, 1], [], []>} : vector<256x256xbf16>, vector<256x128xbf16>, vector<256x128xf32> -> vector<256x128xf32>
    %25 = arith.truncf %24 : vector<256x128xf32> to vector<256x128xbf16>
    %c1 = arith.constant 1 : index
    %c0_20 = arith.constant 0 : index
    %c0_21 = arith.constant 0 : index
    %26 = vector.load %arg2[%c1, %c0_20, %c0_21] : memref<3x128x128xbf16, #tpu.memory_space<vmem>>, vector<1x128x128xbf16>
    %27 = vector.shape_cast %26 : vector<1x128x128xbf16> to vector<128x128xbf16>
    %cst_22 = arith.constant dense<0.000000e+00> : vector<256x128xf32>
    %28 = tpu.matmul %25, %27, %cst_22 {dimension_numbers = #tpu.dot_dimension_numbers<[1], [0], [0], [1], [0, 0, 1, 1], [], []>} : vector<256x128xbf16>, vector<128x128xbf16>, vector<256x128xf32> -> vector<256x128xf32>
    %c1_23 = arith.constant 1 : index
    %c0_24 = arith.constant 0 : index
    %c0_25 = arith.constant 0 : index
    %29 = vector.load %arg3[%c1_23, %c0_24, %c0_25] : memref<3x1x128xf32, #tpu.memory_space<vmem>>, vector<1x1x128xf32>
    %30 = vector.shape_cast %29 : vector<1x1x128xf32> to vector<1x128xf32>
    %31 = vector.broadcast %30 : vector<1x128xf32> to vector<256x128xf32>
    %32 = arith.addf %28, %31 : vector<256x128xf32>
    %cst_26 = arith.constant 0.000000e+00 : f32
    %33 = vector.broadcast %cst_26 : f32 to vector<256x128xf32>
    %34 = arith.maximumf %32, %33 : vector<256x128xf32>
    %35 = arith.truncf %34 : vector<256x128xf32> to vector<256x128xbf16>
    %c1_27 = arith.constant 1 : index
    %c0_28 = arith.constant 0 : index
    %c0_29 = arith.constant 0 : index
    %36 = vector.load %arg4[%c1_27, %c0_28, %c0_29] : memref<3x128x128xbf16, #tpu.memory_space<vmem>>, vector<1x128x128xbf16>
    %37 = vector.shape_cast %36 : vector<1x128x128xbf16> to vector<128x128xbf16>
    %cst_30 = arith.constant dense<0.000000e+00> : vector<256x128xf32>
    %38 = tpu.matmul %35, %37, %cst_30 {dimension_numbers = #tpu.dot_dimension_numbers<[1], [0], [0], [1], [0, 0, 1, 1], [], []>} : vector<256x128xbf16>, vector<128x128xbf16>, vector<256x128xf32> -> vector<256x128xf32>
    %c1_31 = arith.constant 1 : index
    %c0_32 = arith.constant 0 : index
    %c0_33 = arith.constant 0 : index
    %39 = vector.load %arg5[%c1_31, %c0_32, %c0_33] : memref<3x1x128xf32, #tpu.memory_space<vmem>>, vector<1x1x128xf32>
    %40 = vector.shape_cast %39 : vector<1x1x128xf32> to vector<1x128xf32>
    %41 = vector.broadcast %40 : vector<1x128xf32> to vector<256x128xf32>
    %42 = arith.addf %38, %41 : vector<256x128xf32>
    %cst_34 = arith.constant 0.000000e+00 : f32
    %43 = vector.broadcast %cst_34 : f32 to vector<256x128xf32>
    %44 = arith.maximumf %42, %43 : vector<256x128xf32>
    %45 = arith.truncf %44 : vector<256x128xf32> to vector<256x128xbf16>
    %cst_35 = arith.constant dense<0.000000e+00> : vector<256x128xf32>
    %46 = tpu.matmul %0, %45, %cst_35 {dimension_numbers = #tpu.dot_dimension_numbers<[1], [0], [0], [1], [0, 0, 1, 1], [], []>} : vector<256x256xbf16>, vector<256x128xbf16>, vector<256x128xf32> -> vector<256x128xf32>
    %47 = arith.truncf %46 : vector<256x128xf32> to vector<256x128xbf16>
    %c2 = arith.constant 2 : index
    %c0_36 = arith.constant 0 : index
    %c0_37 = arith.constant 0 : index
    %48 = vector.load %arg2[%c2, %c0_36, %c0_37] : memref<3x128x128xbf16, #tpu.memory_space<vmem>>, vector<1x128x128xbf16>
    %49 = vector.shape_cast %48 : vector<1x128x128xbf16> to vector<128x128xbf16>
    %cst_38 = arith.constant dense<0.000000e+00> : vector<256x128xf32>
    %50 = tpu.matmul %47, %49, %cst_38 {dimension_numbers = #tpu.dot_dimension_numbers<[1], [0], [0], [1], [0, 0, 1, 1], [], []>} : vector<256x128xbf16>, vector<128x128xbf16>, vector<256x128xf32> -> vector<256x128xf32>
    %c2_39 = arith.constant 2 : index
    %c0_40 = arith.constant 0 : index
    %c0_41 = arith.constant 0 : index
    %51 = vector.load %arg3[%c2_39, %c0_40, %c0_41] : memref<3x1x128xf32, #tpu.memory_space<vmem>>, vector<1x1x128xf32>
    %52 = vector.shape_cast %51 : vector<1x1x128xf32> to vector<1x128xf32>
    %53 = vector.broadcast %52 : vector<1x128xf32> to vector<256x128xf32>
    %54 = arith.addf %50, %53 : vector<256x128xf32>
    %cst_42 = arith.constant 0.000000e+00 : f32
    %55 = vector.broadcast %cst_42 : f32 to vector<256x128xf32>
    %56 = arith.maximumf %54, %55 : vector<256x128xf32>
    %57 = arith.truncf %56 : vector<256x128xf32> to vector<256x128xbf16>
    %c2_43 = arith.constant 2 : index
    %c0_44 = arith.constant 0 : index
    %c0_45 = arith.constant 0 : index
    %58 = vector.load %arg4[%c2_43, %c0_44, %c0_45] : memref<3x128x128xbf16, #tpu.memory_space<vmem>>, vector<1x128x128xbf16>
    %59 = vector.shape_cast %58 : vector<1x128x128xbf16> to vector<128x128xbf16>
    %cst_46 = arith.constant dense<0.000000e+00> : vector<256x128xf32>
    %60 = tpu.matmul %57, %59, %cst_46 {dimension_numbers = #tpu.dot_dimension_numbers<[1], [0], [0], [1], [0, 0, 1, 1], [], []>} : vector<256x128xbf16>, vector<128x128xbf16>, vector<256x128xf32> -> vector<256x128xf32>
    %c2_47 = arith.constant 2 : index
    %c0_48 = arith.constant 0 : index
    %c0_49 = arith.constant 0 : index
    %61 = vector.load %arg5[%c2_47, %c0_48, %c0_49] : memref<3x1x128xf32, #tpu.memory_space<vmem>>, vector<1x1x128xf32>
    %62 = vector.shape_cast %61 : vector<1x1x128xf32> to vector<1x128xf32>
    %63 = vector.broadcast %62 : vector<1x128xf32> to vector<256x128xf32>
    %64 = arith.addf %60, %63 : vector<256x128xf32>
    %cst_50 = arith.constant 0.000000e+00 : f32
    %65 = vector.broadcast %cst_50 : f32 to vector<256x128xf32>
    %66 = arith.maximumf %64, %65 : vector<256x128xf32>
    %67 = arith.truncf %66 : vector<256x128xf32> to vector<256x128xbf16>
    %c0_51 = arith.constant 0 : index
    %c0_52 = arith.constant 0 : index
    %68 = vector.load %arg6[%c0_51, %c0_52] : memref<8x256xbf16, #tpu.memory_space<vmem>>, vector<8x256xbf16>
    %cst_53 = arith.constant dense<0.000000e+00> : vector<8x128xf32>
    %69 = tpu.matmul %68, %67, %cst_53 {dimension_numbers = #tpu.dot_dimension_numbers<[1], [0], [0], [1], [0, 0, 1, 1], [], []>} : vector<8x256xbf16>, vector<256x128xbf16>, vector<8x128xf32> -> vector<8x128xf32>
    %c0_54 = arith.constant 0 : index
    %c0_55 = arith.constant 0 : index
    %70 = vector.load %arg7[%c0_54, %c0_55] : memref<8x128xf32, #tpu.memory_space<vmem>>, vector<8x128xf32>
    %71 = arith.mulf %69, %70 : vector<8x128xf32>
    %72 = arith.truncf %71 : vector<8x128xf32> to vector<8x128xbf16>
    %c0_56 = arith.constant 0 : index
    %c0_57 = arith.constant 0 : index
    %73 = vector.load %arg8[%c0_56, %c0_57] : memref<128x128xbf16, #tpu.memory_space<vmem>>, vector<128x128xbf16>
    %cst_58 = arith.constant dense<0.000000e+00> : vector<8x128xf32>
    %74 = tpu.matmul %72, %73, %cst_58 {dimension_numbers = #tpu.dot_dimension_numbers<[1], [0], [0], [1], [0, 0, 1, 1], [], []>} : vector<8x128xbf16>, vector<128x128xbf16>, vector<8x128xf32> -> vector<8x128xf32>
    %c0_59 = arith.constant 0 : index
    %c0_60 = arith.constant 0 : index
    %75 = vector.load %arg9[%c0_59, %c0_60] : memref<1x128xf32, #tpu.memory_space<vmem>>, vector<1x128xf32>
    %76 = vector.broadcast %75 : vector<1x128xf32> to vector<8x128xf32>
    %77 = arith.addf %74, %76 : vector<8x128xf32>
    %cst_61 = arith.constant 0.000000e+00 : f32
    %78 = vector.broadcast %cst_61 : f32 to vector<8x128xf32>
    %79 = arith.maximumf %77, %78 : vector<8x128xf32>
    %80 = arith.truncf %79 : vector<8x128xf32> to vector<8x128xbf16>
    %c0_62 = arith.constant 0 : index
    %c0_63 = arith.constant 0 : index
    %81 = vector.load %arg10[%c0_62, %c0_63] : memref<128x128xbf16, #tpu.memory_space<vmem>>, vector<128x128xbf16>
    %cst_64 = arith.constant dense<0.000000e+00> : vector<8x128xf32>
    %82 = tpu.matmul %80, %81, %cst_64 {dimension_numbers = #tpu.dot_dimension_numbers<[1], [0], [0], [1], [0, 0, 1, 1], [], []>} : vector<8x128xbf16>, vector<128x128xbf16>, vector<8x128xf32> -> vector<8x128xf32>
    %c0_65 = arith.constant 0 : index
    %c0_66 = arith.constant 0 : index
    %83 = vector.load %arg11[%c0_65, %c0_66] : memref<1x128xf32, #tpu.memory_space<vmem>>, vector<1x128xf32>
    %84 = vector.broadcast %83 : vector<1x128xf32> to vector<8x128xf32>
    %85 = arith.addf %82, %84 : vector<8x128xf32>
    %c0_67 = arith.constant 0 : index
    %c0_68 = arith.constant 0 : index
    %86 = vector.load %arg12[%c0_67, %c0_68] : memref<8x128xf32, #tpu.memory_space<vmem>>, vector<8x128xf32>
    tpu.vector_store %arg12[%c0_67, %c0_68], %85 {strides = array<i32>} : memref<8x128xf32, #tpu.memory_space<vmem>>, vector<8x128xf32>,
    return
  }
}

</mosaic_0001>

<bundles_post_ra>
// kernel: gin_forward.1
= control target key start
LH: loop header
LB: loop body
LE: loop exit
PB: predicated region body
PF: predicated region fallthrough
CT: control target
= control target key end

     0   :  { %17 = vsyncpa [#allocation3], 0  ;;  %s4993_s0 = inlined_call_operand.hbm [shape: bf16[256,256], index: 0, kind: input, shape index: {}]   ;;  %s4994_s1 = inlined_call_operand.hbm [shape: bf16[256,128], index: 1, kind: input, shape index: {}]   ;;  %s4995_s2 = inlined_call_operand.hbm [shape: bf16[3,128,128], index: 2, kind: input, shape index: {}]   ;;  %s4996_s3 = inlined_call_operand.hbm [shape: f32[3,1,128], index: 3, kind: input, shape index: {}]   ;;  %s4997_s4 = inlined_call_operand.hbm [shape: bf16[3,128,128], index: 4, kind: input, shape index: {}]   ;;  %s4998_s5 = inlined_call_operand.hbm [shape: f32[3,1,128], index: 5, kind: input, shape index: {}]   ;;  %s4999_s6 = inlined_call_operand.vmem [shape: bf16[8,256], index: 6, kind: input, shape index: {}]   ;;  %s5000_s7 = inlined_call_operand.vmem [shape: f32[8,128], index: 7, kind: input, shape index: {}]   ;;  %s5001_s8 = inlined_call_operand.hbm [shape: bf16[128,128], index: 8, kind: input, shape index: {}]   ;;  %s5002_s9 = inlined_call_operand.vmem [shape: f32[1,128], index: 9, kind: input, shape index: {}]   ;;  %s5003_s10 = inlined_call_operand.hbm [shape: bf16[128,128], index: 10, kind: input, shape index: {}]   ;;  %s5004_s11 = inlined_call_operand.vmem [shape: f32[1,128], index: 11, kind: input, shape index: {}]   ;;  %s5005_s12 = inlined_call_operand.hbm [shape: f32[8,128], index: 12, kind: output, shape index: {}]  }
   0x1   :  { %18 = vsyncpa [#allocation6], 0 }
   0x2   :  { %19 = vsyncpa [#allocation9], 0 }
   0x3   :  { %20 = vsyncpa [#allocation12], 0 }
   0x4   :  { %21 = vsyncpa [#allocation15], 0 }
   0x5   :  { %22 = vsyncpa [#allocation4], 0  ;;  %s4345_s21 = smov [#allocation5]   ;;  %s4135_s25 = scalar_lea.hbm %s4994_s1, 2048 }
   0x6   :  { %s40_s22 = sshll.u32 %s4345_s21, 4  ;;  %p4136_p0 = scmp.ne.s32.totalorder %s4994_s1, %s4135_s25  ;;  %s41_s22 = int_to_ptr.vmem [resolvable:$true] %s40_s22 }
   0x7   :  { %p4139_p1 = scmp.lt.u32.totalorder %s4135_s25, %s4994_s1 }
   0x9   :  { %p4141_p2 = pnand %p4139_p1, %p4136_p0 }
   0xb   :  { %4144 = shalt.err (!%p4141_p2)
}
   0xc   :  { %s4145_s30 = scalar_lea.vmem %s41_s22, 2048  ;;  %p4150_p4 = scmp.lt.s32.totalorder %s41_s22, %s41_s22 }
   0xd   :  { %p4146_p3 = scmp.ne.s32.totalorder %s41_s22, %s4145_s30  ;;  %p4151_p5 = scmp.lt.s32.totalorder %s4145_s30, %s4145_s30 }
   0xf   :  { %p4152_p6 = por %p4151_p5, %p4150_p4 }
  0x11   :  { %p4153_p7 = pnand %p4152_p6, %p4146_p3 }
  0x13   :  { %4156 = shalt.err (!%p4153_p7)
}
  0x14   :  { %s4346_s13 = smov 64   ;;  %s4347_s14 = smov 4  }
  0x15   :  { %46 = dma.hbm_to_vmem [thread:$0]  %s4994_s1, 2048, %s41_s22, [#allocation6], %s4346_s13, %s4346_s13, %s4347_s14  }
  0x16   :  { %s4348_s17 = smov [#allocation8]   ;;  %s4157_s21 = scalar_lea.hbm %s4996_s3, 48 }
  0x17   :  { %s64_s18 = sshll.u32 %s4348_s17, 4  ;;  %p4158_p8 = scmp.ne.s32.totalorder %s4996_s3, %s4157_s21  ;;  %s65_s18 = int_to_ptr.vmem [resolvable:$true] %s64_s18 }
  0x18   :  { %p4161_p9 = scmp.lt.u32.totalorder %s4157_s21, %s4996_s3 }
  0x1a   :  { %p4163_p10 = pnand %p4161_p9, %p4158_p8 }
  0x1c   :  { %4166 = shalt.err (!%p4163_p10)
}
  0x1d   :  { %s4167_s27 = scalar_lea.vmem %s65_s18, 48  ;;  %s4171_s1 = scalar_lea.vmem %s65_s18, 64 }
  0x1e   :  { %p4168_p11 = scmp.ne.s32.totalorder %s65_s18, %s4167_s27  ;;  %p4172_p12 = scmp.lt.s32.totalorder %s65_s18, %s65_s18 }
  0x1f   :  { %p4173_p13 = scmp.lt.s32.totalorder %s4171_s1, %s4167_s27 }
  0x21   :  { %p4174_p0 = por %p4173_p13, %p4172_p12 }
  0x23   :  { %p4175_p1 = pnand %p4174_p0, %p4168_p11 }
  0x25   :  { %4178 = shalt.err (!%p4175_p1)
}
  0x26   :  { %s4349_s22 = smov 16   ;;  %s4350_s28 = smov 1  }
  0x27   :  { %70 = dma.hbm_to_vmem [thread:$0]  %s4996_s3, 48, %s65_s18, [#allocation9], %s4349_s22, %s4349_s22, %s4350_s28  }
  0x28   :  { %s4351_s15 = smov [#allocation11]   ;;  %s4352_s17 = smov [#allocation2]  }
  0x29   :  { %s88_s16 = sshll.u32 %s4351_s15, 4  ;;  %s28_s19 = sshll.u32 %s4352_s17, 4  ;;  %s89_s16 = int_to_ptr.vmem [resolvable:$true] %s88_s16  ;;  %s4454_s19 = int_to_ptr.vmem [resolvable:$true] %s28_s19 }
  0x2a   :  { %s4179_s23 = scalar_lea.hbm %s4998_s5, 48 }
  0x2b   :  { %p4180_p2 = scmp.ne.s32.totalorder %s4998_s5, %s4179_s23  ;;  %p4183_p3 = scmp.lt.u32.totalorder %s4179_s23, %s4998_s5 }
  0x2d   :  { %p4185_p4 = pnand %p4183_p3, %p4180_p2 }
  0x2f   :  { %4188 = shalt.err (!%p4185_p4)
}
  0x30   :  { %s4189_s3 = scalar_lea.vmem %s89_s16, 48  ;;  %s4193_s18 = scalar_lea.vmem %s89_s16, 64 }
  0x31   :  { %p4190_p5 = scmp.ne.s32.totalorder %s89_s16, %s4189_s3  ;;  %p4194_p6 = scmp.lt.s32.totalorder %s89_s16, %s89_s16 }
  0x32   :  { %p4195_p7 = scmp.lt.s32.totalorder %s4193_s18, %s4189_s3 }
  0x34   :  { %p4196_p8 = por %p4195_p7, %p4194_p6 }
  0x36   :  { %p4197_p9 = pnand %p4196_p8, %p4190_p5 }
  0x38   :  { %4200 = shalt.err (!%p4197_p9)
}
  0x39   :  { %94 = dma.hbm_to_vmem [thread:$0]  %s4998_s5, 48, %s89_s16, [#allocation12], %s4349_s22, %s4349_s22, %s4350_s28  }
  0x3a   :  { %s4201_s17 = scalar_lea.hbm %s4993_s0, 4096 }
  0x3b   :  { %p4202_p10 = scmp.ne.s32.totalorder %s4993_s0, %s4201_s17  ;;  %p4205_p11 = scmp.lt.u32.totalorder %s4201_s17, %s4993_s0 }
  0x3d   :  { %p4207_p12 = pnand %p4205_p11, %p4202_p10 }
  0x3f   :  { %4210 = shalt.err (!%p4207_p12)
}
  0x40   :  { %s4211_s25 = scalar_lea.vmem %s4454_s19, 4096  ;;  %p4216_p0 = scmp.lt.s32.totalorder %s4454_s19, %s4454_s19 }
  0x41   :  { %p4212_p13 = scmp.ne.s32.totalorder %s4454_s19, %s4211_s25  ;;  %p4217_p1 = scmp.lt.s32.totalorder %s4211_s25, %s4211_s25 }
  0x43   :  { %p4218_p2 = por %p4217_p1, %p4216_p0 }
  0x45   :  { %p4219_p3 = pnand %p4218_p2, %p4212_p13 }
  0x47   :  { %4222 = shalt.err (!%p4219_p3)
}
  0x48   :  { %s4353_s5 = smov 128   ;;  %s4354_s22 = smov 8  }
  0x49   :  { %34 = dma.hbm_to_vmem [thread:$0]  %s4993_s0, 4096, %s4454_s19, [#allocation3], %s4353_s5, %s4353_s5, %s4354_s22  }
  0x4a   :  { %s4355_s26 = smov [#allocation7]   ;;  %s4356_s3 = smov [#allocation10]  }
  0x4b   :  { %s52_s27 = sshll.u32 %s4355_s26, 4  ;;  %s76_s18 = sshll.u32 %s4356_s3, 4  ;;  %s53_s27 = int_to_ptr.vmem [resolvable:$true] %s52_s27  ;;  %s4485_s18 = int_to_ptr.vmem [resolvable:$true] %s76_s18 }
  0x4c   :  { %s4223_s30 = scalar_lea.hbm %s4995_s2, 3072 }
  0x4d   :  { %p4224_p4 = scmp.ne.s32.totalorder %s4995_s2, %s4223_s30  ;;  %p4227_p5 = scmp.lt.u32.totalorder %s4223_s30, %s4995_s2 }
  0x4f   :  { %p4229_p6 = pnand %p4227_p5, %p4224_p4 }
  0x51   :  { %4232 = shalt.err (!%p4229_p6)
}
  0x52   :  { %s4233_s0 = scalar_lea.vmem %s53_s27, 3072  ;;  %p4238_p8 = scmp.lt.s32.totalorder %s53_s27, %s53_s27 }
  0x53   :  { %p4234_p7 = scmp.ne.s32.totalorder %s53_s27, %s4233_s0  ;;  %p4239_p9 = scmp.lt.s32.totalorder %s4233_s0, %s4233_s0 }
  0x55   :  { %p4240_p10 = por %p4239_p9, %p4238_p8 }
  0x57   :  { %p4241_p11 = pnand %p4240_p10, %p4234_p7 }
  0x59   :  { %4244 = shalt.err (!%p4241_p11)
}
  0x5a   :  { %58 = dma.hbm_to_vmem [thread:$0]  %s4995_s2, 3072, %s53_s27, [#allocation6], %s4346_s13, %s4346_s13, %s4347_s14  }
  0x5b   :  { %s4245_s5 = scalar_lea.hbm %s4997_s4, 3072 }
  0x5c   :  { %p4246_p12 = scmp.ne.s32.totalorder %s4997_s4, %s4245_s5  ;;  %p4249_p13 = scmp.lt.u32.totalorder %s4245_s5, %s4997_s4 }
  0x5e   :  { %p4251_p0 = pnand %p4249_p13, %p4246_p12 }
  0x60   :  { %4254 = shalt.err (!%p4251_p0)
}
  0x61   :  { %s4255_s3 = scalar_lea.vmem %s4485_s18, 3072  ;;  %p4260_p2 = scmp.lt.s32.totalorder %s4485_s18, %s4485_s18 }
  0x62   :  { %p4256_p1 = scmp.ne.s32.totalorder %s4485_s18, %s4255_s3  ;;  %p4261_p3 = scmp.lt.s32.totalorder %s4255_s3, %s4255_s3 }
  0x64   :  { %p4262_p4 = por %p4261_p3, %p4260_p2 }
  0x66   :  { %p4263_p5 = pnand %p4262_p4, %p4256_p1 }
  0x68   :  { %4266 = shalt.err (!%p4263_p5)
}
  0x69   :  { %82 = dma.hbm_to_vmem [thread:$0]  %s4997_s4, 3072, %s4485_s18, [#allocation9], %s4346_s13, %s4346_s13, %s4347_s14  }
  0x6a   :  { %s4357_s1 = smov [#allocation13]   ;;  %s4358_s30 = smov [#allocation14]  }
  0x6b   :  { %s104_s29 = sshll.u32 %s4357_s1, 4  ;;  %s118_s15 = sshll.u32 %s4358_s30, 4  ;;  %s105_s29 = int_to_ptr.vmem [resolvable:$true] %s104_s29  ;;  %s4522_s15 = int_to_ptr.vmem [resolvable:$true] %s118_s15 }
  0x6c   :  { %s4267_s21 = scalar_lea.hbm %s5001_s8, 1024 }
  0x6d   :  { %p4268_p6 = scmp.ne.s32.totalorder %s5001_s8, %s4267_s21  ;;  %p4271_p7 = scmp.lt.u32.totalorder %s4267_s21, %s5001_s8 }
  0x6f   :  { %p4273_p8 = pnand %p4271_p7, %p4268_p6 }
  0x71   :  { %4276 = shalt.err (!%p4273_p8)
}
  0x72   :  { %s4277_s4 = scalar_lea.vmem %s105_s29, 1024  ;;  %p4282_p10 = scmp.lt.s32.totalorder %s105_s29, %s105_s29 }
  0x73   :  { %p4278_p9 = scmp.ne.s32.totalorder %s105_s29, %s4277_s4  ;;  %p4283_p11 = scmp.lt.s32.totalorder %s4277_s4, %s4277_s4 }
  0x75   :  { %p4284_p12 = por %p4283_p11, %p4282_p10 }
  0x77   :  { %p4285_p13 = pnand %p4284_p12, %p4278_p9 }
  0x79   :  { %4288 = shalt.err (!%p4285_p13)
}
  0x7a   :  { %110 = dma.hbm_to_vmem [thread:$0]  %s5001_s8, 1024, %s105_s29, [#allocation12], %s4346_s13, %s4346_s13, %s4347_s14  }
  0x7b   :  { %s4289_s28 = scalar_lea.hbm %s5003_s10, 1024 }
  0x7c   :  { %p4290_p0 = scmp.ne.s32.totalorder %s5003_s10, %s4289_s28  ;;  %p4293_p1 = scmp.lt.u32.totalorder %s4289_s28, %s5003_s10 }
  0x7e   :  { %p4295_p2 = pnand %p4293_p1, %p4290_p0 }
  0x80   :  { %4298 = shalt.err (!%p4295_p2)
}
  0x81   :  { %s4299_s27 = scalar_lea.vmem %s4522_s15, 1024  ;;  %p4304_p4 = scmp.lt.s32.totalorder %s4522_s15, %s4522_s15 }
  0x82   :  { %p4300_p3 = scmp.ne.s32.totalorder %s4522_s15, %s4299_s27  ;;  %p4305_p5 = scmp.lt.s32.totalorder %s4299_s27, %s4299_s27 }
  0x84   :  { %p4306_p6 = por %p4305_p5, %p4304_p4 }
  0x86   :  { %p4307_p7 = pnand %p4306_p6, %p4300_p3 }
  0x88   :  { %4310 = shalt.err (!%p4307_p7)
}
  0x89   :  { %124 = dma.hbm_to_vmem [thread:$0]  %s5003_s10, 1024, %s4522_s15, [#allocation15], %s4346_s13, %s4346_s13, %s4347_s14  }
  0x8a   :  { %4333 = dma.done.wait [#allocation3], 4096  }
  0x8b   :  { %4334 = vsyncadd [#allocation3], 4294963200 }
  0x8c   :  { %4335 = dma.done.wait [#allocation6], 5120  }
  0x8d   :  { %4336 = vsyncadd [#allocation6], 4294962176 }
  0x8e   :  { %4337 = dma.done.wait [#allocation9], 3120  }
  0x8f   :  { %4338 = vsyncadd [#allocation9], 4294964176 }
  0x90   :  { %4339 = dma.done.wait [#allocation12], 1072  }
  0x91   :  { %4340 = vsyncadd [#allocation12], 4294966224 }
  0x92   :  { %4341 = dma.done.wait [#allocation15], 1024  }
  0x93   :  { %4342 = vsyncadd [#allocation15], 4294966272  ;;  %v3973_v0 = vld [vmem:[#allocation5 + $0x40] sm:$0xff]   ;;  %v3975_v2 = vld [vmem:[#allocation5 + $0x48] sm:$0xff]   ;;  %vm4360_vm0 = vmmov 0   ;;  %s4361_s17 = smov [#allocation16]  }
  0x94   :  { %v3974_v1 = vld [vmem:[#allocation5] sm:$0xff]   ;;  %3108 = vmatprep.subr.bf16.mxu0 %v3973_v0  ;;  %v3976_v3 = vld [vmem:[#allocation5 + $0x8] sm:$0xff]   ;;  %v3977_v4 = vld [vmem:[#allocation5 + $0x50] sm:$0xff]   ;;  %s2973_s20 = sshll.u32 %s4361_s17, 4  ;;  %s2974_s20 = int_to_ptr.vmem [resolvable:$true] %s2973_s20 }
  0x95   :  { %3109 = vmatpush3.bf16.msra.mxu0 %v3974_v1  ;;  %v3978_v5 = vld [vmem:[#allocation5 + $0x10] sm:$0xff]   ;;  %v3979_v6 = vld [vmem:[#allocation5 + $0x58] sm:$0xff]   ;;  %v3981_v8 = vld [vmem:[#allocation5 + $0x60] sm:$0xff]   ;;  %p4316_p9 = scmp.lt.s32.totalorder %s2974_s20, %s2974_s20 }
  0x96   :  { %3110 = vmatprep.subr.bf16.mxu0 %v3975_v2  ;;  %v3980_v7 = vld [vmem:[#allocation5 + $0x18] sm:$0xff]   ;;  %v3982_v9 = vld [vmem:[#allocation5 + $0x20] sm:$0xff]   ;;  %v3983_v10 = vld [vmem:[#allocation5 + $0x68] sm:$0xff]  }
  0x97   :  { %v4559_v11 = vld [vmem:[#allocation2 + $0x4] ss:$8 sps:$4 sm:$0xff]   ;;  %v3985_v13 = vld [vmem:[#allocation5 + $0x70] sm:$0xff]   ;;  %v3987_v15 = vld [vmem:[#allocation5 + $0x78] sm:$0xff]  }
  0x98   :  { %504 = vmatprep.mubr.bf16.mxu0 %v4559_v11  ;;  %v3984_v12 = vld [vmem:[#allocation5 + $0x28] sm:$0xff]   ;;  %v3986_v14 = vld [vmem:[#allocation5 + $0x30] sm:$0xff]   ;;  %v3988_v16 = vld [vmem:[#allocation5 + $0x38] sm:$0xff]  }
  0x99   :  { %3111 = vmatpush3.bf16.msra.mxu0 %v3976_v3  ;;  %v3991_v17 = vld [vmem:[#allocation2] ss:$8 sps:$4 sm:$0xff]   ;;  %v3992_v18 = vld [vmem:[#allocation2 + $0x14] ss:$8 sps:$4 sm:$0xff]   ;;  %v3994_v19 = vld [vmem:[#allocation2 + $0x10] ss:$8 sps:$4 sm:$0xff]  }
  0x9a   :  { %3112 = vmatprep.subr.bf16.mxu0 %v3977_v4  ;;  %v3995_v20 = vld [vmem:[#allocation2 + $0x24] ss:$8 sps:$4 sm:$0xff]   ;;  %v4039_v23 = vld [vmem:[#allocation7 + $0x10] sm:$0xff]   ;;  %v3997_v24 = vld [vmem:[#allocation2 + $0x20] ss:$8 sps:$4 sm:$0xff]  }
  0x9b   :  { %v4037_v21 = vld [vmem:[#allocation7] sm:$0xff]   ;;  %v4038_v22 = vld [vmem:[#allocation7 + $0x8] sm:$0xff]   ;;  %v4040_v25 = vld [vmem:[#allocation7 + $0x18] sm:$0xff]  }
  0x9c   :  { %3628 = vmatprep.subr.bf16.mxu1 %v4037_v21  ;;  %v3998_v26 = vld [vmem:[#allocation2 + $0x34] ss:$8 sps:$4 sm:$0xff]   ;;  %v4000_v27 = vld [vmem:[#allocation2 + $0x30] ss:$8 sps:$4 sm:$0xff]   ;;  %v4001_v28 = vld [vmem:[#allocation2 + $0x44] ss:$8 sps:$4 sm:$0xff]  }
  0x9d   :  { %3113 = vmatpush3.bf16.msra.mxu0 %v3978_v5  ;;  %3629 = vmatpush3.bf16.msra.mxu1 %v4037_v21  ;;  %v4003_v29 = vld [vmem:[#allocation2 + $0x40] ss:$8 sps:$4 sm:$0xff]   ;;  %v4004_v30 = vld [vmem:[#allocation2 + $0x54] ss:$8 sps:$4 sm:$0xff]   ;;  %v4006_v31 = vld [vmem:[#allocation2 + $0x50] ss:$8 sps:$4 sm:$0xff]  }
  0x9e   :  { %3114 = vmatprep.subr.bf16.mxu0 %v3979_v6  ;;  %3630 = vmatprep.subr.bf16.mxu1 %v4038_v22  ;;  %v4007_v32 = vld [vmem:[#allocation2 + $0x64] ss:$8 sps:$4 sm:$0xff]   ;;  %v4562_v33 = vld [vmem:[#allocation2 + $0x60] ss:$8 sps:$4 sm:$0xff]   ;;  %v4564_v34 = vld [vmem:[#allocation2 + $0x74] ss:$8 sps:$4 sm:$0xff]  }
  0x9f   :  { %v4568_v35 = vld [vmem:[#allocation2 + $0x70] ss:$8 sps:$4 sm:$0xff]   ;;  %v4570_v36 = vld [vmem:[#allocation2 + $0x84] ss:$8 sps:$4 sm:$0xff]   ;;  %v4574_v37 = vld [vmem:[#allocation2 + $0x80] ss:$8 sps:$4 sm:$0xff]  }
  0xa0   :  { %v4576_v38 = vld [vmem:[#allocation2 + $0x94] ss:$8 sps:$4 sm:$0xff]   ;;  %v4580_v39 = vld [vmem:[#allocation2 + $0x90] ss:$8 sps:$4 sm:$0xff]   ;;  %v4582_v40 = vld [vmem:[#allocation2 + $0xa4] ss:$8 sps:$4 sm:$0xff]  }
  0xa1   :  { %3115 = vmatpush3.bf16.msra.mxu0 %v3980_v7  ;;  %3631 = vmatpush3.bf16.msra.mxu1 %v4038_v22  ;;  %v4586_v41 = vld [vmem:[#allocation2 + $0xa0] ss:$8 sps:$4 sm:$0xff]   ;;  %v4588_v42 = vld [vmem:[#allocation2 + $0xb4] ss:$8 sps:$4 sm:$0xff]   ;;  %v4592_v44 = vld [vmem:[#allocation2 + $0xb0] ss:$8 sps:$4 sm:$0xff]  }
  0xa2   :  { %3116 = vmatprep.subr.bf16.mxu0 %v3981_v8  ;;  %3632 = vmatprep.subr.bf16.mxu1 %v4039_v23  ;;  %v4041_v43 = vld [vmem:[#allocation7 + $0x20] sm:$0xff]   ;;  %v4042_v46 = vld [vmem:[#allocation7 + $0x28] sm:$0xff]   ;;  %v4043_v47 = vld [vmem:[#allocation7 + $0x30] sm:$0xff]  }
  0xa3   :  { %v4594_v45 = vld [vmem:[#allocation2 + $0xc4] ss:$8 sps:$4 sm:$0xff]   ;;  %v4598_v48 = vld [vmem:[#allocation2 + $0xc0] ss:$8 sps:$4 sm:$0xff]   ;;  %v4600_v49 = vld [vmem:[#allocation2 + $0xd4] ss:$8 sps:$4 sm:$0xff]  }
  0xa4   :  { %v4044_v50 = vld [vmem:[#allocation7 + $0x38] sm:$0xff]   ;;  %v4606_v52 = vld [vmem:[#allocation2 + $0xe4] ss:$8 sps:$4 sm:$0xff]   ;;  %v4610_v53 = vld [vmem:[#allocation2 + $0xe0] ss:$8 sps:$4 sm:$0xff]  }
  0xa5   :  { %3117 = vmatpush3.bf16.msra.mxu0 %v3982_v9  ;;  %3633 = vmatpush3.bf16.msra.mxu1 %v4039_v23  ;;  %v4604_v51 = vld [vmem:[#allocation2 + $0xd0] ss:$8 sps:$4 sm:$0xff]   ;;  %v4612_v54 = vld [vmem:[#allocation2 + $0xf4] ss:$8 sps:$4 sm:$0xff]   ;;  %v4045_v57 = vld [vmem:[#allocation10] sm:$0xff]  }
  0xa6   :  { %3118 = vmatprep.subr.bf16.mxu0 %v3983_v10  ;;  %3634 = vmatprep.subr.bf16.mxu1 %v4040_v25  ;;  %v4616_v55 = vld [vmem:[#allocation2 + $0xf0] ss:$8 sps:$4 sm:$0xff]   ;;  %v4049_v21 = vld [vmem:[#allocation10 + $0x20] sm:$0xff]  }
  0xa7   :  { %v4046_v7 = vld [vmem:[#allocation10 + $0x8] sm:$0xff]  }
  0xa9   :  { %3119 = vmatpush3.bf16.msra.mxu0 %v3984_v12  ;;  %3635 = vmatpush3.bf16.msra.mxu1 %v4040_v25  ;;  %v4047_v12 = vld [vmem:[#allocation10 + $0x10] sm:$0xff]   ;;  %v4050_v25 = vld [vmem:[#allocation10 + $0x28] sm:$0xff]  }
  0xaa   :  { %3120 = vmatprep.subr.bf16.mxu0 %v3985_v13  ;;  %3636 = vmatprep.subr.bf16.mxu1 %v4041_v43 }
  0xad   :  { %3121 = vmatpush3.bf16.msra.mxu0 %v3986_v14  ;;  %3637 = vmatpush3.bf16.msra.mxu1 %v4041_v43 }
  0xae   :  { %3122 = vmatprep.subr.bf16.mxu0 %v3987_v15  ;;  %3638 = vmatprep.subr.bf16.mxu1 %v4042_v46 }
  0xb1   :  { %3123 = vmatpush3.bf16.msra.mxu0 %v3988_v16  ;;  %3639 = vmatpush3.bf16.msra.mxu1 %v4042_v46  ;;  %v4048_v16 = vld [vmem:[#allocation10 + $0x18] sm:$0xff]  }
  0xb2   :  { %3640 = vmatprep.subr.bf16.mxu1 %v4043_v47 }
  0xb4   :  { %505 = vmatmul.mubr.bf16.vlgmr.msra.gmra.mrb[0].mxu0 %v3991_v17 }
  0xb5   :  { %512 = vmatprep.mubr.bf16.mxu0 %v3992_v18  ;;  %3641 = vmatpush3.bf16.msra.mxu1 %v4043_v47 }
  0xb6   :  { %3642 = vmatprep.subr.bf16.mxu1 %v4044_v50 }
  0xb9   :  { %3643 = vmatpush3.bf16.msra.mxu1 %v4044_v50 }
  0xba   :  { %3676 = vmatprep.subr.bf16.mxu1 %v4045_v57 }
  0xbc   :  { %513 = vmatmul.mubr.bf16.gmra.mrb[4].mxu0 %v3994_v19 }
  0xbd   :  { %520 = vmatprep.mubr.bf16.mxu0 %v3995_v20 }
  0xc4   :  { %521 = vmatmul.mubr.bf16.gmra.mrb[8].mxu0 %v3997_v24 }
  0xc5   :  { %528 = vmatprep.mubr.bf16.mxu0 %v3998_v26 }
  0xcc   :  { %529 = vmatmul.mubr.bf16.gmra.mrb[12].mxu0 %v4000_v27 }
  0xcd   :  { %536 = vmatprep.mubr.bf16.mxu0 %v4001_v28 }
  0xd4   :  { %537 = vmatmul.mubr.bf16.gmra.mrb[16].mxu0 %v4003_v29 }
  0xd5   :  { %544 = vmatprep.mubr.bf16.mxu0 %v4004_v30 }
  0xdc   :  { %545 = vmatmul.mubr.bf16.gmra.mrb[20].mxu0 %v4006_v31 }
  0xdd   :  { %552 = vmatprep.mubr.bf16.mxu0 %v4007_v32 }
  0xe4   :  { %553 = vmatmul.mubr.bf16.gmra.mrb[24].mxu0 %v4562_v33 }
  0xe5   :  { %560 = vmatprep.mubr.bf16.mxu0 %v4564_v34 }
  0xec   :  { %561 = vmatmul.mubr.bf16.gmra.mrb[28].mxu0 %v4568_v35 }
  0xed   :  { %568 = vmatprep.mubr.bf16.mxu0 %v4570_v36 }
  0xf4   :  { %569 = vmatmul.mubr.bf16.gmra.mrb[32].mxu0 %v4574_v37 }
  0xf5   :  { %576 = vmatprep.mubr.bf16.mxu0 %v4576_v38 }
  0xfc   :  { %577 = vmatmul.mubr.bf16.gmra.mrb[36].mxu0 %v4580_v39 }
  0xfd   :  { %584 = vmatprep.mubr.bf16.mxu0 %v4582_v40 }
 0x104   :  { %585 = vmatmul.mubr.bf16.gmra.mrb[40].mxu0 %v4586_v41 }
 0x105   :  { %592 = vmatprep.mubr.bf16.mxu0 %v4588_v42 }
 0x10c   :  { %593 = vmatmul.mubr.bf16.gmra.mrb[44].mxu0 %v4592_v44 }
 0x10d   :  { %600 = vmatprep.mubr.bf16.mxu0 %v4594_v45 }
 0x114   :  { %601 = vmatmul.mubr.bf16.gmra.mrb[48].mxu0 %v4598_v48 }
 0x115   :  { %608 = vmatprep.mubr.bf16.mxu0 %v4600_v49 }
 0x11c   :  { %609 = vmatmul.mubr.bf16.gmra.mrb[52].mxu0 %v4604_v51 }
 0x11d   :  { %616 = vmatprep.mubr.bf16.mxu0 %v4606_v52 }
 0x124   :  { %617 = vmatmul.mubr.bf16.gmra.mrb[56].mxu0 %v4610_v53 }
 0x125   :  { %624 = vmatprep.mubr.bf16.mxu0 %v4612_v54 }
 0x12c   :  { %625 = vmatmul.mubr.bf16.gmra.mrb[60].mxu0 %v4616_v55 }
 0x12d   :  { %1241 = vmatprep.mubr.bf16.mxu0 %v4559_v11 }
 0x187   :  { %v3124_v56 = vpop.f32.mrb[0].mxu0 }
 0x188   :  { %v3125_v58 = vpop.f32.mrb[1].mxu0 }
 0x189   :  { %v3126_v59 = vadd.f32 %v3125_v58, %v3124_v56  ;;  %v3127_v60 = vpop.f32.mrb[2].mxu0 }
 0x18a   :  { %v3128_v61 = vpop.f32.mrb[3].mxu0 }
 0x18b   :  { %v3129_v62 = vadd.f32 %v3128_v61, %v3127_v60 }
 0x18d   :  { %v633_v63 = vpack.c.bf16 %v3129_v62, %v3126_v59 }
 0x18f   :  { %v3130_v0 = vpop.f32.mrb[4].mxu0  ;;  %3644 = vmatprep.mubr.bf16.mxu1 %v633_v63 }
 0x190   :  { %v3131_v1 = vpop.f32.mrb[5].mxu0 }
 0x191   :  { %v3132_v2 = vadd.f32 %v3131_v1, %v3130_v0  ;;  %v3133_v3 = vpop.f32.mrb[6].mxu0 }
 0x192   :  { %v3134_v4 = vpop.f32.mrb[7].mxu0 }
 0x193   :  { %v3135_v5 = vadd.f32 %v3134_v4, %v3133_v3 }
 0x195   :  { %v634_v6 = vpack.c.bf16 %v3135_v5, %v3132_v2 }
 0x197   :  { %v3136_v8 = vpop.f32.mrb[8].mxu0  ;;  %3645 = vmatmul.mubr.bf16.vlgmr.msra.gmra.mrb[0].mxu1 %v634_v6 }
 0x198   :  { %v3137_v9 = vpop.f32.mrb[9].mxu0  ;;  %3677 = vmatpush3.bf16.msra.mxu1 %v4045_v57 }
 0x199   :  { %v3138_v10 = vadd.f32 %v3137_v9, %v3136_v8  ;;  %v3139_v11 = vpop.f32.mrb[10].mxu0  ;;  %3678 = vmatprep.subr.bf16.mxu1 %v4046_v7 }
 0x19a   :  { %v3140_v13 = vpop.f32.mrb[11].mxu0 }
 0x19b   :  { %v3141_v14 = vadd.f32 %v3140_v13, %v3139_v11 }
 0x19c   :  { %3679 = vmatpush3.bf16.msra.mxu1 %v4046_v7 }
 0x19d   :  { %v635_v15 = vpack.c.bf16 %v3141_v14, %v3138_v10  ;;  %3680 = vmatprep.subr.bf16.mxu1 %v4047_v12 }
 0x19f   :  { %v3142_v17 = vpop.f32.mrb[12].mxu0  ;;  %3648 = vmatprep.mubr.bf16.mxu1 %v635_v15 }
 0x1a0   :  { %v3143_v18 = vpop.f32.mrb[13].mxu0  ;;  %3681 = vmatpush3.bf16.msra.mxu1 %v4047_v12 }
 0x1a1   :  { %v3144_v19 = vadd.f32 %v3143_v18, %v3142_v17  ;;  %v3145_v20 = vpop.f32.mrb[14].mxu0  ;;  %3682 = vmatprep.subr.bf16.mxu1 %v4048_v16 }
 0x1a2   :  { %v3146_v22 = vpop.f32.mrb[15].mxu0 }
 0x1a3   :  { %v3147_v23 = vadd.f32 %v3146_v22, %v3145_v20 }
 0x1a4   :  { %3683 = vmatpush3.bf16.msra.mxu1 %v4048_v16 }
 0x1a5   :  { %v636_v24 = vpack.c.bf16 %v3147_v23, %v3144_v19  ;;  %3684 = vmatprep.subr.bf16.mxu1 %v4049_v21 }
 0x1a7   :  { %v3148_v26 = vpop.f32.mrb[16].mxu0  ;;  %3649 = vmatmul.mubr.bf16.gmra.mrb[4].mxu1 %v636_v24 }
 0x1a8   :  { %v3149_v27 = vpop.f32.mrb[17].mxu0  ;;  %3685 = vmatpush3.bf16.msra.mxu1 %v4049_v21 }
 0x1a9   :  { %v3150_v28 = vadd.f32 %v3149_v27, %v3148_v26  ;;  %v3151_v29 = vpop.f32.mrb[18].mxu0  ;;  %3686 = vmatprep.subr.bf16.mxu1 %v4050_v25 }
 0x1aa   :  { %v3152_v30 = vpop.f32.mrb[19].mxu0 }
 0x1ab   :  { %v3153_v31 = vadd.f32 %v3152_v30, %v3151_v29 }
 0x1ac   :  { %3687 = vmatpush3.bf16.msra.mxu1 %v4050_v25 }
 0x1ad   :  { %v637_v32 = vpack.c.bf16 %v3153_v31, %v3150_v28 }
 0x1af   :  { %v3154_v43 = vpop.f32.mrb[20].mxu0  ;;  %3652 = vmatprep.mubr.bf16.mxu1 %v637_v32 }
 0x1b0   :  { %v3155_v46 = vpop.f32.mrb[21].mxu0 }
 0x1b1   :  { %v3156_v47 = vadd.f32 %v3155_v46, %v3154_v43  ;;  %v3157_v50 = vpop.f32.mrb[22].mxu0 }
 0x1b2   :  { %v3158_v56 = vpop.f32.mrb[23].mxu0 }
 0x1b3   :  { %v3159_v57 = vadd.f32 %v3158_v56, %v3157_v50 }
 0x1b5   :  { %v638_v58 = vpack.c.bf16 %v3159_v57, %v3156_v47 }
 0x1b7   :  { %v3160_v59 = vpop.f32.mrb[24].mxu0  ;;  %3653 = vmatmul.mubr.bf16.gmra.mrb[8].mxu1 %v638_v58 }
 0x1b8   :  { %v3161_v60 = vpop.f32.mrb[25].mxu0 }
 0x1b9   :  { %v3162_v61 = vadd.f32 %v3161_v60, %v3160_v59  ;;  %v3163_v62 = vpop.f32.mrb[26].mxu0 }
 0x1ba   :  { %v3164_v63 = vpop.f32.mrb[27].mxu0 }
 0x1bb   :  { %v3165_v0 = vadd.f32 %v3164_v63, %v3163_v62  ;;  %v4051_v62 = vld [vmem:[#allocation10 + $0x30] sm:$0xff]  }
 0x1bc   :  { %3688 = vmatprep.subr.bf16.mxu1 %v4051_v62 }
 0x1bd   :  { %v639_v1 = vpack.c.bf16 %v3165_v0, %v3162_v61  ;;  %3689 = vmatpush3.bf16.msra.mxu1 %v4051_v62 }
 0x1bf   :  { %v3166_v2 = vpop.f32.mrb[28].mxu0  ;;  %3656 = vmatprep.mubr.bf16.mxu1 %v639_v1  ;;  %v4052_v1 = vld [vmem:[#allocation10 + $0x38] sm:$0xff]  }
 0x1c0   :  { %v3167_v3 = vpop.f32.mrb[29].mxu0  ;;  %3690 = vmatprep.subr.bf16.mxu1 %v4052_v1 }
 0x1c1   :  { %v3168_v4 = vadd.f32 %v3167_v3, %v3166_v2  ;;  %v3169_v5 = vpop.f32.mrb[30].mxu0  ;;  %3691 = vmatpush3.bf16.msra.mxu1 %v4052_v1 }
 0x1c2   :  { %v3170_v6 = vpop.f32.mrb[31].mxu0 }
 0x1c3   :  { %v3171_v7 = vadd.f32 %v3170_v6, %v3169_v5 }
 0x1c5   :  { %v640_v8 = vpack.c.bf16 %v3171_v7, %v3168_v4 }
 0x1c7   :  { %v3172_v9 = vpop.f32.mrb[32].mxu0  ;;  %3657 = vmatmul.mubr.bf16.gmra.mrb[12].mxu1 %v640_v8 }
 0x1c8   :  { %v3173_v10 = vpop.f32.mrb[33].mxu0 }
 0x1c9   :  { %v3174_v11 = vadd.f32 %v3173_v10, %v3172_v9  ;;  %v3175_v12 = vpop.f32.mrb[34].mxu0 }
 0x1ca   :  { %v3176_v13 = vpop.f32.mrb[35].mxu0 }
 0x1cb   :  { %v3177_v14 = vadd.f32 %v3176_v13, %v3175_v12 }
 0x1cd   :  { %v641_v15 = vpack.c.bf16 %v3177_v14, %v3174_v11 }
 0x1cf   :  { %v3178_v16 = vpop.f32.mrb[36].mxu0  ;;  %3660 = vmatprep.mubr.bf16.mxu1 %v641_v15 }
 0x1d0   :  { %v3179_v17 = vpop.f32.mrb[37].mxu0 }
 0x1d1   :  { %v3180_v18 = vadd.f32 %v3179_v17, %v3178_v16  ;;  %v3181_v19 = vpop.f32.mrb[38].mxu0 }
 0x1d2   :  { %v3182_v20 = vpop.f32.mrb[39].mxu0 }
 0x1d3   :  { %v3183_v21 = vadd.f32 %v3182_v20, %v3181_v19 }
 0x1d5   :  { %v642_v22 = vpack.c.bf16 %v3183_v21, %v3180_v18 }
 0x1d7   :  { %v3184_v23 = vpop.f32.mrb[40].mxu0  ;;  %3661 = vmatmul.mubr.bf16.gmra.mrb[16].mxu1 %v642_v22  ;;  %v4620_v22 = vld [vmem:[#allocation8] ss:$0 sm:$0xff] }
 0x1d8   :  { %v3185_v24 = vpop.f32.mrb[41].mxu0 }
 0x1d9   :  { %v3186_v25 = vadd.f32 %v3185_v24, %v3184_v23  ;;  %v3187_v26 = vpop.f32.mrb[42].mxu0 }
 0x1da   :  { %v3188_v27 = vpop.f32.mrb[43].mxu0 }
 0x1db   :  { %v3189_v28 = vadd.f32 %v3188_v27, %v3187_v26 }
 0x1dd   :  { %v643_v29 = vpack.c.bf16 %v3189_v28, %v3186_v25 }
 0x1df   :  { %v3190_v30 = vpop.f32.mrb[44].mxu0  ;;  %3664 = vmatprep.mubr.bf16.mxu1 %v643_v29 }
 0x1e0   :  { %v3191_v31 = vpop.f32.mrb[45].mxu0 }
 0x1e1   :  { %v3192_v32 = vadd.f32 %v3191_v31, %v3190_v30  ;;  %v3193_v43 = vpop.f32.mrb[46].mxu0 }
 0x1e2   :  { %v3194_v46 = vpop.f32.mrb[47].mxu0 }
 0x1e3   :  { %v3195_v47 = vadd.f32 %v3194_v46, %v3193_v43 }
 0x1e5   :  { %v644_v50 = vpack.c.bf16 %v3195_v47, %v3192_v32 }
 0x1e7   :  { %v3196_v56 = vpop.f32.mrb[48].mxu0  ;;  %3665 = vmatmul.mubr.bf16.gmra.mrb[20].mxu1 %v644_v50 }
 0x1e8   :  { %v3197_v57 = vpop.f32.mrb[49].mxu0 }
 0x1e9   :  { %v3198_v58 = vadd.f32 %v3197_v57, %v3196_v56  ;;  %v3199_v59 = vpop.f32.mrb[50].mxu0 }
 0x1ea   :  { %v3200_v60 = vpop.f32.mrb[51].mxu0 }
 0x1eb   :  { %v3201_v61 = vadd.f32 %v3200_v60, %v3199_v59 }
 0x1ed   :  { %v645_v63 = vpack.c.bf16 %v3201_v61, %v3198_v58 }
 0x1ef   :  { %v3202_v0 = vpop.f32.mrb[52].mxu0  ;;  %3668 = vmatprep.mubr.bf16.mxu1 %v645_v63 }
 0x1f0   :  { %v3203_v2 = vpop.f32.mrb[53].mxu0 }
 0x1f1   :  { %v3204_v3 = vadd.f32 %v3203_v2, %v3202_v0  ;;  %v3205_v4 = vpop.f32.mrb[54].mxu0 }
 0x1f2   :  { %v3206_v5 = vpop.f32.mrb[55].mxu0 }
 0x1f3   :  { %v3207_v6 = vadd.f32 %v3206_v5, %v3205_v4 }
 0x1f5   :  { %v646_v7 = vpack.c.bf16 %v3207_v6, %v3204_v3 }
 0x1f7   :  { %v3208_v8 = vpop.f32.mrb[56].mxu0  ;;  %3669 = vmatmul.mubr.bf16.gmra.mrb[24].mxu1 %v646_v7 }
 0x1f8   :  { %v3209_v9 = vpop.f32.mrb[57].mxu0 }
 0x1f9   :  { %v3210_v10 = vadd.f32 %v3209_v9, %v3208_v8  ;;  %v3211_v11 = vpop.f32.mrb[58].mxu0 }
 0x1fa   :  { %v3212_v12 = vpop.f32.mrb[59].mxu0 }
 0x1fb   :  { %v3213_v13 = vadd.f32 %v3212_v12, %v3211_v11 }
 0x1fd   :  { %v647_v14 = vpack.c.bf16 %v3213_v13, %v3210_v10 }
 0x1ff   :  { %v3214_v15 = vpop.f32.mrb[60].mxu0  ;;  %3672 = vmatprep.mubr.bf16.mxu1 %v647_v14 }
 0x200   :  { %v3215_v16 = vpop.f32.mrb[61].mxu0 }
 0x201   :  { %v3216_v17 = vadd.f32 %v3215_v16, %v3214_v15  ;;  %v3217_v18 = vpop.f32.mrb[62].mxu0 }
 0x202   :  { %v3218_v19 = vpop.f32.mrb[63].mxu0 }
 0x203   :  { %v3219_v20 = vadd.f32 %v3218_v19, %v3217_v18 }
 0x205   :  { %v648_v21 = vpack.c.bf16 %v3219_v20, %v3216_v17 }
 0x207   :  { %3673 = vmatmul.mubr.bf16.gmra.mrb[28].mxu1 %v648_v21 }
 0x26a   :  { %v3646_v23 = vpop.f32.mrb[0].mxu1 }
 0x26b   :  { %v763_v24 = vadd.f32 %v3646_v23, %v4620_v22  ;;  %v754_v25 = vpop.f32.mrb[1].mxu1 }
 0x26c   :  { %v755_v26 = vadd.f32 %v4620_v22, %v754_v25  ;;  %v3647_v27 = vpop.f32.mrb[2].mxu1 }
 0x26d   :  { %v766_v28 = vadd.f32 %v3647_v27, %v4620_v22  ;;  %v757_v29 = vpop.f32.mrb[3].mxu1  ;;  %v883_v31 = vmax.f32 %v763_v24, 0.0 }
 0x26e   :  { %v758_v30 = vadd.f32 %v4620_v22, %v757_v29  ;;  %v881_v43 = vmax.f32 %v755_v26, 0.0 }
 0x26f   :  { %v884_v32 = vmax.f32 %v766_v28, 0.0 }
 0x270   :  { %v882_v46 = vmax.f32 %v758_v30, 0.0 }
 0x271   :  { %v914_v47 = vpack.c.bf16 %v884_v32, %v883_v31 }
 0x272   :  { %v913_v50 = vpack.c.bf16 %v882_v46, %v881_v43 }
 0x274   :  { %3692 = vmatprep.mubr.bf16.mxu1 %v913_v50 }
 0x275   :  { %3693 = vmatmul.mubr.bf16.vlgmr.msra.gmra.mrb[32].mxu1 %v914_v47 }
 0x27a   :  { %v3650_v56 = vpop.f32.mrb[4].mxu1 }
 0x27b   :  { %v779_v57 = vadd.f32 %v3650_v56, %v4620_v22  ;;  %v770_v58 = vpop.f32.mrb[5].mxu1 }
 0x27c   :  { %v771_v59 = vadd.f32 %v4620_v22, %v770_v58  ;;  %v3651_v60 = vpop.f32.mrb[6].mxu1 }
 0x27d   :  { %v782_v61 = vadd.f32 %v3651_v60, %v4620_v22  ;;  %v773_v62 = vpop.f32.mrb[7].mxu1  ;;  %v887_v0 = vmax.f32 %v779_v57, 0.0 }
 0x27e   :  { %v774_v63 = vadd.f32 %v4620_v22, %v773_v62  ;;  %v885_v2 = vmax.f32 %v771_v59, 0.0 }
 0x27f   :  { %v888_v1 = vmax.f32 %v782_v61, 0.0 }
 0x280   :  { %v886_v3 = vmax.f32 %v774_v63, 0.0 }
 0x281   :  { %v916_v4 = vpack.c.bf16 %v888_v1, %v887_v0 }
 0x282   :  { %v915_v5 = vpack.c.bf16 %v886_v3, %v885_v2 }
 0x284   :  { %3696 = vmatprep.mubr.bf16.mxu1 %v915_v5 }
 0x285   :  { %3697 = vmatmul.mubr.bf16.gmra.mrb[36].mxu1 %v916_v4 }
 0x28a   :  { %v3654_v6 = vpop.f32.mrb[8].mxu1 }
 0x28b   :  { %v795_v7 = vadd.f32 %v3654_v6, %v4620_v22  ;;  %v786_v8 = vpop.f32.mrb[9].mxu1 }
 0x28c   :  { %v787_v9 = vadd.f32 %v4620_v22, %v786_v8  ;;  %v3655_v10 = vpop.f32.mrb[10].mxu1 }
 0x28d   :  { %v798_v11 = vadd.f32 %v3655_v10, %v4620_v22  ;;  %v789_v12 = vpop.f32.mrb[11].mxu1  ;;  %v891_v14 = vmax.f32 %v795_v7, 0.0 }
 0x28e   :  { %v790_v13 = vadd.f32 %v4620_v22, %v789_v12  ;;  %v889_v16 = vmax.f32 %v787_v9, 0.0 }
 0x28f   :  { %v892_v15 = vmax.f32 %v798_v11, 0.0 }
 0x290   :  { %v890_v17 = vmax.f32 %v790_v13, 0.0 }
 0x291   :  { %v918_v18 = vpack.c.bf16 %v892_v15, %v891_v14 }
 0x292   :  { %v917_v19 = vpack.c.bf16 %v890_v17, %v889_v16 }
 0x294   :  { %3700 = vmatprep.mubr.bf16.mxu1 %v917_v19 }
 0x295   :  { %3701 = vmatmul.mubr.bf16.gmra.mrb[40].mxu1 %v918_v18 }
 0x29a   :  { %v3658_v20 = vpop.f32.mrb[12].mxu1 }
 0x29b   :  { %v811_v21 = vadd.f32 %v3658_v20, %v4620_v22  ;;  %v802_v23 = vpop.f32.mrb[13].mxu1 }
 0x29c   :  { %v803_v24 = vadd.f32 %v4620_v22, %v802_v23  ;;  %v3659_v25 = vpop.f32.mrb[14].mxu1 }
 0x29d   :  { %v814_v26 = vadd.f32 %v3659_v25, %v4620_v22  ;;  %v805_v27 = vpop.f32.mrb[15].mxu1  ;;  %v895_v29 = vmax.f32 %v811_v21, 0.0 }
 0x29e   :  { %v806_v28 = vadd.f32 %v4620_v22, %v805_v27  ;;  %v893_v31 = vmax.f32 %v803_v24, 0.0 }
 0x29f   :  { %v896_v30 = vmax.f32 %v814_v26, 0.0 }
 0x2a0   :  { %v894_v32 = vmax.f32 %v806_v28, 0.0 }
 0x2a1   :  { %v920_v43 = vpack.c.bf16 %v896_v30, %v895_v29 }
 0x2a2   :  { %v919_v46 = vpack.c.bf16 %v894_v32, %v893_v31 }
 0x2a4   :  { %3704 = vmatprep.mubr.bf16.mxu1 %v919_v46 }
 0x2a5   :  { %3705 = vmatmul.mubr.bf16.gmra.mrb[44].mxu1 %v920_v43 }
 0x2aa   :  { %v3662_v47 = vpop.f32.mrb[16].mxu1 }
 0x2ab   :  { %v827_v50 = vadd.f32 %v3662_v47, %v4620_v22  ;;  %v818_v56 = vpop.f32.mrb[17].mxu1 }
 0x2ac   :  { %v819_v57 = vadd.f32 %v4620_v22, %v818_v56  ;;  %v3663_v58 = vpop.f32.mrb[18].mxu1 }
 0x2ad   :  { %v830_v59 = vadd.f32 %v3663_v58, %v4620_v22  ;;  %v821_v60 = vpop.f32.mrb[19].mxu1  ;;  %v899_v62 = vmax.f32 %v827_v50, 0.0 }
 0x2ae   :  { %v822_v61 = vadd.f32 %v4620_v22, %v821_v60  ;;  %v897_v0 = vmax.f32 %v819_v57, 0.0 }
 0x2af   :  { %v900_v63 = vmax.f32 %v830_v59, 0.0 }
 0x2b0   :  { %v898_v1 = vmax.f32 %v822_v61, 0.0 }
 0x2b1   :  { %v922_v2 = vpack.c.bf16 %v900_v63, %v899_v62 }
 0x2b2   :  { %v921_v3 = vpack.c.bf16 %v898_v1, %v897_v0 }
 0x2b4   :  { %3708 = vmatprep.mubr.bf16.mxu1 %v921_v3 }
 0x2b5   :  { %3709 = vmatmul.mubr.bf16.gmra.mrb[48].mxu1 %v922_v2  ;;  %v4654_v2 = vld [vmem:[#allocation11] ss:$0 sm:$0xff] }
 0x2ba   :  { %v3666_v4 = vpop.f32.mrb[20].mxu1 }
 0x2bb   :  { %v843_v5 = vadd.f32 %v3666_v4, %v4620_v22  ;;  %v834_v6 = vpop.f32.mrb[21].mxu1 }
 0x2bc   :  { %v835_v7 = vadd.f32 %v4620_v22, %v834_v6  ;;  %v3667_v8 = vpop.f32.mrb[22].mxu1 }
 0x2bd   :  { %v846_v9 = vadd.f32 %v3667_v8, %v4620_v22  ;;  %v837_v10 = vpop.f32.mrb[23].mxu1  ;;  %v903_v12 = vmax.f32 %v843_v5, 0.0 }
 0x2be   :  { %v838_v11 = vadd.f32 %v4620_v22, %v837_v10  ;;  %v901_v14 = vmax.f32 %v835_v7, 0.0 }
 0x2bf   :  { %v904_v13 = vmax.f32 %v846_v9, 0.0 }
 0x2c0   :  { %v902_v15 = vmax.f32 %v838_v11, 0.0 }
 0x2c1   :  { %v924_v16 = vpack.c.bf16 %v904_v13, %v903_v12 }
 0x2c2   :  { %v923_v17 = vpack.c.bf16 %v902_v15, %v901_v14 }
 0x2c4   :  { %3712 = vmatprep.mubr.bf16.mxu1 %v923_v17 }
 0x2c5   :  { %3713 = vmatmul.mubr.bf16.gmra.mrb[52].mxu1 %v924_v16 }
 0x2ca   :  { %v3670_v18 = vpop.f32.mrb[24].mxu1 }
 0x2cb   :  { %v859_v19 = vadd.f32 %v3670_v18, %v4620_v22  ;;  %v850_v20 = vpop.f32.mrb[25].mxu1 }
 0x2cc   :  { %v851_v21 = vadd.f32 %v4620_v22, %v850_v20  ;;  %v3671_v23 = vpop.f32.mrb[26].mxu1 }
 0x2cd   :  { %v862_v24 = vadd.f32 %v3671_v23, %v4620_v22  ;;  %v853_v25 = vpop.f32.mrb[27].mxu1  ;;  %v907_v27 = vmax.f32 %v859_v19, 0.0 }
 0x2ce   :  { %v854_v26 = vadd.f32 %v4620_v22, %v853_v25  ;;  %v905_v29 = vmax.f32 %v851_v21, 0.0 }
 0x2cf   :  { %v908_v28 = vmax.f32 %v862_v24, 0.0 }
 0x2d0   :  { %v906_v30 = vmax.f32 %v854_v26, 0.0 }
 0x2d1   :  { %v926_v31 = vpack.c.bf16 %v908_v28, %v907_v27 }
 0x2d2   :  { %v925_v32 = vpack.c.bf16 %v906_v30, %v905_v29 }
 0x2d4   :  { %3716 = vmatprep.mubr.bf16.mxu1 %v925_v32 }
 0x2d5   :  { %3717 = vmatmul.mubr.bf16.gmra.mrb[56].mxu1 %v926_v31 }
 0x2da   :  { %v3674_v43 = vpop.f32.mrb[28].mxu1 }
 0x2db   :  { %v875_v46 = vadd.f32 %v3674_v43, %v4620_v22  ;;  %v866_v47 = vpop.f32.mrb[29].mxu1 }
 0x2dc   :  { %v867_v50 = vadd.f32 %v4620_v22, %v866_v47  ;;  %v3675_v56 = vpop.f32.mrb[30].mxu1 }
 0x2dd   :  { %v878_v57 = vadd.f32 %v3675_v56, %v4620_v22  ;;  %v869_v58 = vpop.f32.mrb[31].mxu1  ;;  %v911_v60 = vmax.f32 %v875_v46, 0.0 }
 0x2de   :  { %v870_v59 = vadd.f32 %v4620_v22, %v869_v58  ;;  %v909_v62 = vmax.f32 %v867_v50, 0.0 }
 0x2df   :  { %v912_v61 = vmax.f32 %v878_v57, 0.0 }
 0x2e0   :  { %v910_v63 = vmax.f32 %v870_v59, 0.0 }
 0x2e1   :  { %v928_v0 = vpack.c.bf16 %v912_v61, %v911_v60 }
 0x2e2   :  { %v927_v1 = vpack.c.bf16 %v910_v63, %v909_v62 }
 0x2e4   :  { %3720 = vmatprep.mubr.bf16.mxu1 %v927_v1 }
 0x2e5   :  { %3721 = vmatmul.mubr.bf16.gmra.mrb[60].mxu1 %v928_v0 }
 0x348   :  { %v3694_v3 = vpop.f32.mrb[32].mxu1 }
 0x349   :  { %v1043_v4 = vadd.f32 %v3694_v3, %v4654_v2  ;;  %v1034_v5 = vpop.f32.mrb[33].mxu1 }
 0x34a   :  { %v1035_v6 = vadd.f32 %v4654_v2, %v1034_v5  ;;  %v3695_v7 = vpop.f32.mrb[34].mxu1 }
 0x34b   :  { %v1046_v8 = vadd.f32 %v3695_v7, %v4654_v2  ;;  %v1037_v22 = vpop.f32.mrb[35].mxu1  ;;  %v1163_v10 = vmax.f32 %v1043_v4, 0.0 }
 0x34c   :  { %v1038_v9 = vadd.f32 %v4654_v2, %v1037_v22  ;;  %v1161_v12 = vmax.f32 %v1035_v6, 0.0 }
 0x34d   :  { %v1164_v11 = vmax.f32 %v1046_v8, 0.0 }
 0x34e   :  { %v1162_v13 = vmax.f32 %v1038_v9, 0.0 }
 0x34f   :  { %v1194_v14 = vpack.c.bf16 %v1164_v11, %v1163_v10 }
 0x350   :  { %v1193_v15 = vpack.c.bf16 %v1162_v13, %v1161_v12 }
 0x358   :  { %v3698_v16 = vpop.f32.mrb[36].mxu1 }
 0x359   :  { %v1059_v17 = vadd.f32 %v3698_v16, %v4654_v2  ;;  %v1050_v18 = vpop.f32.mrb[37].mxu1 }
 0x35a   :  { %v1051_v19 = vadd.f32 %v4654_v2, %v1050_v18  ;;  %v3699_v20 = vpop.f32.mrb[38].mxu1 }
 0x35b   :  { %v1062_v21 = vadd.f32 %v3699_v20, %v4654_v2  ;;  %v1053_v23 = vpop.f32.mrb[39].mxu1  ;;  %v1167_v25 = vmax.f32 %v1059_v17, 0.0 }
 0x35c   :  { %v1054_v24 = vadd.f32 %v4654_v2, %v1053_v23  ;;  %v1165_v27 = vmax.f32 %v1051_v19, 0.0 }
 0x35d   :  { %v1168_v26 = vmax.f32 %v1062_v21, 0.0 }
 0x35e   :  { %v1166_v28 = vmax.f32 %v1054_v24, 0.0 }
 0x35f   :  { %v4664_v29 = vpack.c.bf16 %v1168_v26, %v1167_v25 }
 0x360   :  { %v1195_v30 = vpack.c.bf16 %v1166_v28, %v1165_v27 }
 0x368   :  { %v3702_v31 = vpop.f32.mrb[40].mxu1 }
 0x369   :  { %v1075_v32 = vadd.f32 %v3702_v31, %v4654_v2  ;;  %v1066_v43 = vpop.f32.mrb[41].mxu1 }
 0x36a   :  { %v1067_v46 = vadd.f32 %v4654_v2, %v1066_v43  ;;  %v3703_v47 = vpop.f32.mrb[42].mxu1 }
 0x36b   :  { %v1078_v50 = vadd.f32 %v3703_v47, %v4654_v2  ;;  %v1069_v56 = vpop.f32.mrb[43].mxu1  ;;  %v1171_v58 = vmax.f32 %v1075_v32, 0.0 }
 0x36c   :  { %v1070_v57 = vadd.f32 %v4654_v2, %v1069_v56  ;;  %v1169_v60 = vmax.f32 %v1067_v46, 0.0 }
 0x36d   :  { %v1172_v59 = vmax.f32 %v1078_v50, 0.0 }
 0x36e   :  { %v1170_v61 = vmax.f32 %v1070_v57, 0.0 }
 0x36f   :  { %v4670_v62 = vpack.c.bf16 %v1172_v59, %v1171_v58 }
 0x370   :  { %v4672_v63 = vpack.c.bf16 %v1170_v61, %v1169_v60 }
 0x378   :  { %v3706_v0 = vpop.f32.mrb[44].mxu1 }
 0x379   :  { %v1091_v1 = vadd.f32 %v3706_v0, %v4654_v2  ;;  %v1082_v3 = vpop.f32.mrb[45].mxu1 }
 0x37a   :  { %v1083_v4 = vadd.f32 %v4654_v2, %v1082_v3  ;;  %v3707_v5 = vpop.f32.mrb[46].mxu1 }
 0x37b   :  { %v1094_v6 = vadd.f32 %v3707_v5, %v4654_v2  ;;  %v1085_v7 = vpop.f32.mrb[47].mxu1  ;;  %v1175_v22 = vmax.f32 %v1091_v1, 0.0 }
 0x37c   :  { %v1086_v8 = vadd.f32 %v4654_v2, %v1085_v7  ;;  %v1173_v10 = vmax.f32 %v1083_v4, 0.0 }
 0x37d   :  { %v1176_v9 = vmax.f32 %v1094_v6, 0.0 }
 0x37e   :  { %v1174_v11 = vmax.f32 %v1086_v8, 0.0 }
 0x37f   :  { %v4678_v12 = vpack.c.bf16 %v1176_v9, %v1175_v22 }
 0x380   :  { %v4680_v13 = vpack.c.bf16 %v1174_v11, %v1173_v10 }
 0x388   :  { %v3710_v16 = vpop.f32.mrb[48].mxu1 }
 0x389   :  { %v1107_v17 = vadd.f32 %v3710_v16, %v4654_v2  ;;  %v1098_v18 = vpop.f32.mrb[49].mxu1 }
 0x38a   :  { %v1099_v19 = vadd.f32 %v4654_v2, %v1098_v18  ;;  %v3711_v20 = vpop.f32.mrb[50].mxu1 }
 0x38b   :  { %v1110_v21 = vadd.f32 %v3711_v20, %v4654_v2  ;;  %v1101_v23 = vpop.f32.mrb[51].mxu1  ;;  %v1179_v25 = vmax.f32 %v1107_v17, 0.0 }
 0x38c   :  { %v1102_v24 = vadd.f32 %v4654_v2, %v1101_v23  ;;  %v1177_v27 = vmax.f32 %v1099_v19, 0.0 }
 0x38d   :  { %v1180_v26 = vmax.f32 %v1110_v21, 0.0 }
 0x38e   :  { %v1178_v28 = vmax.f32 %v1102_v24, 0.0 }
 0x38f   :  { %v1202_v31 = vpack.c.bf16 %v1180_v26, %v1179_v25 }
 0x390   :  { %v1201_v32 = vpack.c.bf16 %v1178_v28, %v1177_v27 }
 0x392   :  { %3268 = vmatprep.subr.bf16.mxu0 %v1201_v32 }
 0x393   :  { %3269 = vmatpush3.bf16.msra.mxu0 %v1193_v15 }
 0x394   :  { %3270 = vmatprep.subr.bf16.mxu0 %v1202_v31 }
 0x397   :  { %3271 = vmatpush3.bf16.msra.mxu0 %v1194_v14 }
 0x398   :  { %v3714_v43 = vpop.f32.mrb[52].mxu1 }
 0x399   :  { %v1123_v46 = vadd.f32 %v3714_v43, %v4654_v2  ;;  %v1114_v47 = vpop.f32.mrb[53].mxu1 }
 0x39a   :  { %v1115_v50 = vadd.f32 %v4654_v2, %v1114_v47  ;;  %v3715_v56 = vpop.f32.mrb[54].mxu1  ;;  %v4055_v47 = vld [vmem:[#allocation7 + $0x50] sm:$0xff]  }
 0x39b   :  { %v1126_v57 = vadd.f32 %v3715_v56, %v4654_v2  ;;  %v1117_v58 = vpop.f32.mrb[55].mxu1  ;;  %v1183_v60 = vmax.f32 %v1123_v46, 0.0  ;;  %v4054_v46 = vld [vmem:[#allocation7 + $0x48] sm:$0xff]   ;;  %v4706_v56 = vld [vmem:[#allocation2 + $0x14] ss:$8 sps:$4 sm:$0xff]  }
 0x39c   :  { %v1118_v59 = vadd.f32 %v4654_v2, %v1117_v58  ;;  %v1181_v0 = vmax.f32 %v1115_v50, 0.0  ;;  %v4056_v50 = vld [vmem:[#allocation7 + $0x58] sm:$0xff]  }
 0x39d   :  { %v1184_v61 = vmax.f32 %v1126_v57, 0.0  ;;  %v4712_v57 = vld [vmem:[#allocation2 + $0x24] ss:$8 sps:$4 sm:$0xff]   ;;  %v4718_v58 = vld [vmem:[#allocation2 + $0x34] ss:$8 sps:$4 sm:$0xff]  }
 0x39e   :  { %v1182_v1 = vmax.f32 %v1118_v59, 0.0  ;;  %v4721_v59 = vld [vmem:[#allocation2 + $0x30] ss:$8 sps:$4 sm:$0xff]  }
 0x39f   :  { %v1204_v3 = vpack.c.bf16 %v1184_v61, %v1183_v60  ;;  %v4724_v60 = vld [vmem:[#allocation2 + $0x44] ss:$8 sps:$4 sm:$0xff]   ;;  %v4727_v61 = vld [vmem:[#allocation2 + $0x40] ss:$8 sps:$4 sm:$0xff]  }
 0x3a0   :  { %v1203_v15 = vpack.c.bf16 %v1182_v1, %v1181_v0  ;;  %v4730_v0 = vld [vmem:[#allocation2 + $0x54] ss:$8 sps:$4 sm:$0xff]   ;;  %v4733_v1 = vld [vmem:[#allocation2 + $0x50] ss:$8 sps:$4 sm:$0xff]  }
 0x3a2   :  { %3272 = vmatprep.subr.bf16.mxu0 %v1203_v15  ;;  %v4057_v15 = vld [vmem:[#allocation7 + $0x60] sm:$0xff]  }
 0x3a3   :  { %3273 = vmatpush3.bf16.msra.mxu0 %v1195_v30 }
 0x3a4   :  { %3274 = vmatprep.subr.bf16.mxu0 %v1204_v3  ;;  %v4736_v3 = vld [vmem:[#allocation2 + $0x64] ss:$8 sps:$4 sm:$0xff]  }
 0x3a7   :  { %3275 = vmatpush3.bf16.msra.mxu0 %v4664_v29 }
 0x3a8   :  { %v3718_v14 = vpop.f32.mrb[56].mxu1 }
 0x3a9   :  { %v1139_v4 = vadd.f32 %v3718_v14, %v4654_v2  ;;  %v1130_v5 = vpop.f32.mrb[57].mxu1 }
 0x3aa   :  { %v1131_v6 = vadd.f32 %v4654_v2, %v1130_v5  ;;  %v3719_v7 = vpop.f32.mrb[58].mxu1 }
 0x3ab   :  { %v1142_v8 = vadd.f32 %v3719_v7, %v4654_v2  ;;  %v1133_v22 = vpop.f32.mrb[59].mxu1  ;;  %v1187_v10 = vmax.f32 %v1139_v4, 0.0 }
 0x3ac   :  { %v1134_v9 = vadd.f32 %v4654_v2, %v1133_v22  ;;  %v1185_v16 = vmax.f32 %v1131_v6, 0.0 }
 0x3ad   :  { %v1188_v11 = vmax.f32 %v1142_v8, 0.0  ;;  %v4063_v8 = vld [vmem:[#allocation10 + $0x50] sm:$0xff]  }
 0x3ae   :  { %v1186_v17 = vmax.f32 %v1134_v9, 0.0 }
 0x3af   :  { %v1206_v30 = vpack.c.bf16 %v1188_v11, %v1187_v10  ;;  %v4064_v11 = vld [vmem:[#allocation10 + $0x58] sm:$0xff]  }
 0x3b0   :  { %v1205_v18 = vpack.c.bf16 %v1186_v17, %v1185_v16 }
 0x3b2   :  { %3276 = vmatprep.subr.bf16.mxu0 %v1205_v18 }
 0x3b3   :  { %3277 = vmatpush3.bf16.msra.mxu0 %v4672_v63 }
 0x3b4   :  { %3278 = vmatprep.subr.bf16.mxu0 %v1206_v30 }
 0x3b7   :  { %3279 = vmatpush3.bf16.msra.mxu0 %v4670_v62  ;;  %v4053_v62 = vld [vmem:[#allocation7 + $0x40] sm:$0xff]  }
 0x3b8   :  { %v3722_v29 = vpop.f32.mrb[60].mxu1  ;;  %3724 = vmatprep.subr.bf16.mxu1 %v4053_v62 }
 0x3b9   :  { %v1155_v19 = vadd.f32 %v3722_v29, %v4654_v2  ;;  %v1146_v20 = vpop.f32.mrb[61].mxu1  ;;  %3725 = vmatpush3.bf16.msra.mxu1 %v4053_v62  ;;  %v4065_v29 = vld [vmem:[#allocation10 + $0x60] sm:$0xff]  }
 0x3ba   :  { %v1147_v21 = vadd.f32 %v4654_v2, %v1146_v20  ;;  %v3723_v23 = vpop.f32.mrb[62].mxu1  ;;  %3726 = vmatprep.subr.bf16.mxu1 %v4054_v46 }
 0x3bb   :  { %v1158_v24 = vadd.f32 %v3723_v23, %v4654_v2  ;;  %v1149_v25 = vpop.f32.mrb[63].mxu1  ;;  %v1191_v27 = vmax.f32 %v1155_v19, 0.0  ;;  %v4066_v23 = vld [vmem:[#allocation10 + $0x68] sm:$0xff]  }
 0x3bc   :  { %v1150_v26 = vadd.f32 %v4654_v2, %v1149_v25  ;;  %v1189_v31 = vmax.f32 %v1147_v21, 0.0  ;;  %v4703_v2 = vld [vmem:[#allocation2] ss:$8 sps:$4 sm:$0xff]  }
 0x3bd   :  { %v1192_v28 = vmax.f32 %v1158_v24, 0.0  ;;  %3727 = vmatpush3.bf16.msra.mxu1 %v4054_v46 }
 0x3be   :  { %v1190_v32 = vmax.f32 %v1150_v26, 0.0  ;;  %3728 = vmatprep.subr.bf16.mxu1 %v4055_v47 }
 0x3bf   :  { %v1208_v63 = vpack.c.bf16 %v1192_v28, %v1191_v27 }
 0x3c0   :  { %v1207_v43 = vpack.c.bf16 %v1190_v32, %v1189_v31 }
 0x3c1   :  { %3729 = vmatpush3.bf16.msra.mxu1 %v4055_v47 }
 0x3c2   :  { %3280 = vmatprep.subr.bf16.mxu0 %v1207_v43  ;;  %3730 = vmatprep.subr.bf16.mxu1 %v4056_v50 }
 0x3c3   :  { %3281 = vmatpush3.bf16.msra.mxu0 %v4680_v13  ;;  %v4709_v13 = vld [vmem:[#allocation2 + $0x10] ss:$8 sps:$4 sm:$0xff]  }
 0x3c4   :  { %3282 = vmatprep.subr.bf16.mxu0 %v1208_v63 }
 0x3c5   :  { %3731 = vmatpush3.bf16.msra.mxu1 %v4056_v50 }
 0x3c6   :  { %3732 = vmatprep.subr.bf16.mxu1 %v4057_v15 }
 0x3c7   :  { %3283 = vmatpush3.bf16.msra.mxu0 %v4678_v12  ;;  %v4715_v12 = vld [vmem:[#allocation2 + $0x20] ss:$8 sps:$4 sm:$0xff]  }
 0x3c9   :  { %3733 = vmatpush3.bf16.msra.mxu1 %v4057_v15 }
 0x3ca   :  { %1242 = vmatmul.mubr.bf16.vlgmr.msra.gmra.mrb[64].mxu0 %v4703_v2 }
 0x3cb   :  { %1249 = vmatprep.mubr.bf16.mxu0 %v4706_v56 }
 0x3d2   :  { %1250 = vmatmul.mubr.bf16.gmra.mrb[68].mxu0 %v4709_v13 }
 0x3d3   :  { %1257 = vmatprep.mubr.bf16.mxu0 %v4712_v57 }
 0x3da   :  { %1258 = vmatmul.mubr.bf16.gmra.mrb[72].mxu0 %v4715_v12 }
 0x3db   :  { %1265 = vmatprep.mubr.bf16.mxu0 %v4718_v58 }
 0x3e2   :  { %1266 = vmatmul.mubr.bf16.gmra.mrb[76].mxu0 %v4721_v59 }
 0x3e3   :  { %1273 = vmatprep.mubr.bf16.mxu0 %v4724_v60 }
 0x3ea   :  { %1274 = vmatmul.mubr.bf16.gmra.mrb[80].mxu0 %v4727_v61 }
 0x3eb   :  { %1281 = vmatprep.mubr.bf16.mxu0 %v4730_v0 }
 0x3f2   :  { %1282 = vmatmul.mubr.bf16.gmra.mrb[84].mxu0 %v4733_v1 }
 0x3f3   :  { %1289 = vmatprep.mubr.bf16.mxu0 %v4736_v3 }
 0x3fa   :  { %1290 = vmatmul.mubr.bf16.gmra.mrb[88].mxu0 %v4562_v33  ;;  %v4058_v33 = vld [vmem:[#allocation7 + $0x68] sm:$0xff]  }
 0x3fb   :  { %1297 = vmatprep.mubr.bf16.mxu0 %v4564_v34  ;;  %3734 = vmatprep.subr.bf16.mxu1 %v4058_v33  ;;  %v4059_v34 = vld [vmem:[#allocation7 + $0x70] sm:$0xff]  }
 0x3fc   :  { %3735 = vmatpush3.bf16.msra.mxu1 %v4058_v33 }
 0x3fd   :  { %3736 = vmatprep.subr.bf16.mxu1 %v4059_v34 }
 0x400   :  { %3737 = vmatpush3.bf16.msra.mxu1 %v4059_v34 }
 0x402   :  { %1298 = vmatmul.mubr.bf16.gmra.mrb[92].mxu0 %v4568_v35  ;;  %v4060_v35 = vld [vmem:[#allocation7 + $0x78] sm:$0xff]  }
 0x403   :  { %1305 = vmatprep.mubr.bf16.mxu0 %v4570_v36  ;;  %3738 = vmatprep.subr.bf16.mxu1 %v4060_v35  ;;  %v4115_v36 = vld [vmem:[#allocation2 + $0x4] ss:$8 sps:$4 sm:$0xff]  }
 0x404   :  { %3739 = vmatpush3.bf16.msra.mxu1 %v4060_v35 }
 0x40a   :  { %1306 = vmatmul.mubr.bf16.gmra.mrb[96].mxu0 %v4574_v37 }
 0x40b   :  { %1313 = vmatprep.mubr.bf16.mxu0 %v4576_v38  ;;  %v4061_v38 = vld [vmem:[#allocation10 + $0x40] sm:$0xff]  }
 0x40c   :  { %3772 = vmatprep.subr.bf16.mxu1 %v4061_v38 }
 0x412   :  { %1314 = vmatmul.mubr.bf16.gmra.mrb[100].mxu0 %v4580_v39 }
 0x413   :  { %1321 = vmatprep.mubr.bf16.mxu0 %v4582_v40 }
 0x41a   :  { %1322 = vmatmul.mubr.bf16.gmra.mrb[104].mxu0 %v4586_v41 }
 0x41b   :  { %1329 = vmatprep.mubr.bf16.mxu0 %v4588_v42 }
 0x422   :  { %1330 = vmatmul.mubr.bf16.gmra.mrb[108].mxu0 %v4592_v44 }
 0x423   :  { %1337 = vmatprep.mubr.bf16.mxu0 %v4594_v45 }
 0x42a   :  { %1338 = vmatmul.mubr.bf16.gmra.mrb[112].mxu0 %v4598_v48 }
 0x42b   :  { %1345 = vmatprep.mubr.bf16.mxu0 %v4600_v49 }
 0x432   :  { %1346 = vmatmul.mubr.bf16.gmra.mrb[116].mxu0 %v4604_v51 }
 0x433   :  { %1353 = vmatprep.mubr.bf16.mxu0 %v4606_v52 }
 0x43a   :  { %1354 = vmatmul.mubr.bf16.gmra.mrb[120].mxu0 %v4610_v53 }
 0x43b   :  { %1361 = vmatprep.mubr.bf16.mxu0 %v4612_v54 }
 0x442   :  { %1362 = vmatmul.mubr.bf16.gmra.mrb[124].mxu0 %v4616_v55  ;;  %v4062_v55 = vld [vmem:[#allocation10 + $0x48] sm:$0xff]  }
 0x443   :  { %1982 = vmatprep.mubr.bf16.mxu0 %v4115_v36 }
 0x49d   :  { %v3284_v37 = vpop.f32.mrb[64].mxu0 }
 0x49e   :  { %v3285_v39 = vpop.f32.mrb[65].mxu0 }
 0x49f   :  { %v3286_v40 = vadd.f32 %v3285_v39, %v3284_v37  ;;  %v3287_v41 = vpop.f32.mrb[66].mxu0 }
 0x4a0   :  { %v3288_v42 = vpop.f32.mrb[67].mxu0 }
 0x4a1   :  { %v3289_v44 = vadd.f32 %v3288_v42, %v3287_v41 }
 0x4a3   :  { %v1370_v45 = vpack.c.bf16 %v3289_v44, %v3286_v40 }
 0x4a5   :  { %v3290_v48 = vpop.f32.mrb[68].mxu0  ;;  %3740 = vmatprep.mubr.bf16.mxu1 %v1370_v45 }
 0x4a6   :  { %v3291_v49 = vpop.f32.mrb[69].mxu0 }
 0x4a7   :  { %v3292_v51 = vadd.f32 %v3291_v49, %v3290_v48  ;;  %v3293_v52 = vpop.f32.mrb[70].mxu0 }
 0x4a8   :  { %v3294_v53 = vpop.f32.mrb[71].mxu0 }
 0x4a9   :  { %v3295_v54 = vadd.f32 %v3294_v53, %v3293_v52 }
 0x4ab   :  { %v1371_v14 = vpack.c.bf16 %v3295_v54, %v3292_v51 }
 0x4ad   :  { %v3296_v4 = vpop.f32.mrb[72].mxu0  ;;  %3741 = vmatmul.mubr.bf16.vlgmr.msra.gmra.mrb[64].mxu1 %v1371_v14 }
 0x4ae   :  { %v3297_v5 = vpop.f32.mrb[73].mxu0  ;;  %3773 = vmatpush3.bf16.msra.mxu1 %v4061_v38 }
 0x4af   :  { %v3298_v6 = vadd.f32 %v3297_v5, %v3296_v4  ;;  %v3299_v7 = vpop.f32.mrb[74].mxu0  ;;  %3774 = vmatprep.subr.bf16.mxu1 %v4062_v55 }
 0x4b0   :  { %v3300_v22 = vpop.f32.mrb[75].mxu0 }
 0x4b1   :  { %v3301_v9 = vadd.f32 %v3300_v22, %v3299_v7 }
 0x4b2   :  { %3775 = vmatpush3.bf16.msra.mxu1 %v4062_v55 }
 0x4b3   :  { %v1372_v10 = vpack.c.bf16 %v3301_v9, %v3298_v6  ;;  %3776 = vmatprep.subr.bf16.mxu1 %v4063_v8 }
 0x4b5   :  { %v3302_v16 = vpop.f32.mrb[76].mxu0  ;;  %3744 = vmatprep.mubr.bf16.mxu1 %v1372_v10 }
 0x4b6   :  { %v3303_v17 = vpop.f32.mrb[77].mxu0  ;;  %3777 = vmatpush3.bf16.msra.mxu1 %v4063_v8 }
 0x4b7   :  { %v3304_v30 = vadd.f32 %v3303_v17, %v3302_v16  ;;  %v3305_v18 = vpop.f32.mrb[78].mxu0  ;;  %3778 = vmatprep.subr.bf16.mxu1 %v4064_v11 }
 0x4b8   :  { %v3306_v19 = vpop.f32.mrb[79].mxu0 }
 0x4b9   :  { %v3307_v20 = vadd.f32 %v3306_v19, %v3305_v18 }
 0x4ba   :  { %3779 = vmatpush3.bf16.msra.mxu1 %v4064_v11 }
 0x4bb   :  { %v1373_v21 = vpack.c.bf16 %v3307_v20, %v3304_v30  ;;  %3780 = vmatprep.subr.bf16.mxu1 %v4065_v29 }
 0x4bd   :  { %v3308_v24 = vpop.f32.mrb[80].mxu0  ;;  %3745 = vmatmul.mubr.bf16.gmra.mrb[68].mxu1 %v1373_v21 }
 0x4be   :  { %v3309_v25 = vpop.f32.mrb[81].mxu0  ;;  %3781 = vmatpush3.bf16.msra.mxu1 %v4065_v29 }
 0x4bf   :  { %v3310_v26 = vadd.f32 %v3309_v25, %v3308_v24  ;;  %v3311_v27 = vpop.f32.mrb[82].mxu0  ;;  %3782 = vmatprep.subr.bf16.mxu1 %v4066_v23 }
 0x4c0   :  { %v3312_v28 = vpop.f32.mrb[83].mxu0 }
 0x4c1   :  { %v3313_v31 = vadd.f32 %v3312_v28, %v3311_v27 }
 0x4c2   :  { %3783 = vmatpush3.bf16.msra.mxu1 %v4066_v23 }
 0x4c3   :  { %v1374_v32 = vpack.c.bf16 %v3313_v31, %v3310_v26 }
 0x4c5   :  { %v3314_v63 = vpop.f32.mrb[84].mxu0  ;;  %3748 = vmatprep.mubr.bf16.mxu1 %v1374_v32 }
 0x4c6   :  { %v3315_v43 = vpop.f32.mrb[85].mxu0 }
 0x4c7   :  { %v3316_v62 = vadd.f32 %v3315_v43, %v3314_v63  ;;  %v3317_v46 = vpop.f32.mrb[86].mxu0 }
 0x4c8   :  { %v3318_v47 = vpop.f32.mrb[87].mxu0 }
 0x4c9   :  { %v3319_v50 = vadd.f32 %v3318_v47, %v3317_v46  ;;  %v4067_v46 = vld [vmem:[#allocation10 + $0x70] sm:$0xff]  }
 0x4ca   :  { %3784 = vmatprep.subr.bf16.mxu1 %v4067_v46 }
 0x4cb   :  { %v1375_v15 = vpack.c.bf16 %v3319_v50, %v3316_v62  ;;  %3785 = vmatpush3.bf16.msra.mxu1 %v4067_v46 }
 0x4cd   :  { %v3320_v33 = vpop.f32.mrb[88].mxu0  ;;  %3749 = vmatmul.mubr.bf16.gmra.mrb[72].mxu1 %v1375_v15  ;;  %v4068_v15 = vld [vmem:[#allocation10 + $0x78] sm:$0xff]  }
 0x4ce   :  { %v3321_v34 = vpop.f32.mrb[89].mxu0  ;;  %3786 = vmatprep.subr.bf16.mxu1 %v4068_v15 }
 0x4cf   :  { %v3322_v35 = vadd.f32 %v3321_v34, %v3320_v33  ;;  %v3323_v36 = vpop.f32.mrb[90].mxu0  ;;  %3787 = vmatpush3.bf16.msra.mxu1 %v4068_v15 }
 0x4d0   :  { %v3324_v37 = vpop.f32.mrb[91].mxu0 }
 0x4d1   :  { %v3325_v38 = vadd.f32 %v3324_v37, %v3323_v36 }
 0x4d3   :  { %v1376_v39 = vpack.c.bf16 %v3325_v38, %v3322_v35 }
 0x4d5   :  { %v3326_v40 = vpop.f32.mrb[92].mxu0  ;;  %3752 = vmatprep.mubr.bf16.mxu1 %v1376_v39 }
 0x4d6   :  { %v3327_v41 = vpop.f32.mrb[93].mxu0 }
 0x4d7   :  { %v3328_v42 = vadd.f32 %v3327_v41, %v3326_v40  ;;  %v3329_v44 = vpop.f32.mrb[94].mxu0 }
 0x4d8   :  { %v3330_v45 = vpop.f32.mrb[95].mxu0 }
 0x4d9   :  { %v3331_v48 = vadd.f32 %v3330_v45, %v3329_v44 }
 0x4db   :  { %v1377_v49 = vpack.c.bf16 %v3331_v48, %v3328_v42 }
 0x4dd   :  { %v3332_v51 = vpop.f32.mrb[96].mxu0  ;;  %3753 = vmatmul.mubr.bf16.gmra.mrb[76].mxu1 %v1377_v49 }
 0x4de   :  { %v3333_v52 = vpop.f32.mrb[97].mxu0 }
 0x4df   :  { %v3334_v53 = vadd.f32 %v3333_v52, %v3332_v51  ;;  %v3335_v54 = vpop.f32.mrb[98].mxu0 }
 0x4e0   :  { %v3336_v14 = vpop.f32.mrb[99].mxu0 }
 0x4e1   :  { %v3337_v55 = vadd.f32 %v3336_v14, %v3335_v54 }
 0x4e3   :  { %v1378_v4 = vpack.c.bf16 %v3337_v55, %v3334_v53 }
 0x4e5   :  { %v3338_v5 = vpop.f32.mrb[100].mxu0  ;;  %3756 = vmatprep.mubr.bf16.mxu1 %v1378_v4  ;;  %v4758_v4 = vld [vmem:[#allocation8 + $0x1] ss:$0 sm:$0xff] }
 0x4e6   :  { %v3339_v6 = vpop.f32.mrb[101].mxu0 }
 0x4e7   :  { %v3340_v7 = vadd.f32 %v3339_v6, %v3338_v5  ;;  %v3341_v8 = vpop.f32.mrb[102].mxu0 }
 0x4e8   :  { %v3342_v22 = vpop.f32.mrb[103].mxu0 }
 0x4e9   :  { %v3343_v9 = vadd.f32 %v3342_v22, %v3341_v8 }
 0x4eb   :  { %v1379_v10 = vpack.c.bf16 %v3343_v9, %v3340_v7 }
 0x4ed   :  { %v3344_v11 = vpop.f32.mrb[104].mxu0  ;;  %3757 = vmatmul.mubr.bf16.gmra.mrb[80].mxu1 %v1379_v10 }
 0x4ee   :  { %v3345_v16 = vpop.f32.mrb[105].mxu0 }
 0x4ef   :  { %v3346_v17 = vadd.f32 %v3345_v16, %v3344_v11  ;;  %v3347_v30 = vpop.f32.mrb[106].mxu0 }
 0x4f0   :  { %v3348_v18 = vpop.f32.mrb[107].mxu0 }
 0x4f1   :  { %v3349_v29 = vadd.f32 %v3348_v18, %v3347_v30 }
 0x4f3   :  { %v1380_v19 = vpack.c.bf16 %v3349_v29, %v3346_v17 }
 0x4f5   :  { %v3350_v20 = vpop.f32.mrb[108].mxu0  ;;  %3760 = vmatprep.mubr.bf16.mxu1 %v1380_v19 }
 0x4f6   :  { %v3351_v21 = vpop.f32.mrb[109].mxu0 }
 0x4f7   :  { %v3352_v23 = vadd.f32 %v3351_v21, %v3350_v20  ;;  %v3353_v24 = vpop.f32.mrb[110].mxu0 }
 0x4f8   :  { %v3354_v25 = vpop.f32.mrb[111].mxu0 }
 0x4f9   :  { %v3355_v26 = vadd.f32 %v3354_v25, %v3353_v24 }
 0x4fb   :  { %v1381_v27 = vpack.c.bf16 %v3355_v26, %v3352_v23 }
 0x4fd   :  { %v3356_v28 = vpop.f32.mrb[112].mxu0  ;;  %3761 = vmatmul.mubr.bf16.gmra.mrb[84].mxu1 %v1381_v27 }
 0x4fe   :  { %v3357_v31 = vpop.f32.mrb[113].mxu0 }
 0x4ff   :  { %v3358_v32 = vadd.f32 %v3357_v31, %v3356_v28  ;;  %v3359_v63 = vpop.f32.mrb[114].mxu0 }
 0x500   :  { %v3360_v43 = vpop.f32.mrb[115].mxu0 }
 0x501   :  { %v3361_v62 = vadd.f32 %v3360_v43, %v3359_v63 }
 0x503   :  { %v1382_v47 = vpack.c.bf16 %v3361_v62, %v3358_v32 }
 0x505   :  { %v3362_v50 = vpop.f32.mrb[116].mxu0  ;;  %3764 = vmatprep.mubr.bf16.mxu1 %v1382_v47 }
 0x506   :  { %v3363_v33 = vpop.f32.mrb[117].mxu0 }
 0x507   :  { %v3364_v34 = vadd.f32 %v3363_v33, %v3362_v50  ;;  %v3365_v35 = vpop.f32.mrb[118].mxu0 }
 0x508   :  { %v3366_v36 = vpop.f32.mrb[119].mxu0 }
 0x509   :  { %v3367_v37 = vadd.f32 %v3366_v36, %v3365_v35 }
 0x50b   :  { %v1383_v38 = vpack.c.bf16 %v3367_v37, %v3364_v34 }
 0x50d   :  { %v3368_v39 = vpop.f32.mrb[120].mxu0  ;;  %3765 = vmatmul.mubr.bf16.gmra.mrb[88].mxu1 %v1383_v38 }
 0x50e   :  { %v3369_v40 = vpop.f32.mrb[121].mxu0 }
 0x50f   :  { %v3370_v41 = vadd.f32 %v3369_v40, %v3368_v39  ;;  %v3371_v42 = vpop.f32.mrb[122].mxu0 }
 0x510   :  { %v3372_v44 = vpop.f32.mrb[123].mxu0 }
 0x511   :  { %v3373_v45 = vadd.f32 %v3372_v44, %v3371_v42 }
 0x513   :  { %v1384_v48 = vpack.c.bf16 %v3373_v45, %v3370_v41 }
 0x515   :  { %v3374_v49 = vpop.f32.mrb[124].mxu0  ;;  %3768 = vmatprep.mubr.bf16.mxu1 %v1384_v48 }
 0x516   :  { %v3375_v51 = vpop.f32.mrb[125].mxu0 }
 0x517   :  { %v3376_v52 = vadd.f32 %v3375_v51, %v3374_v49  ;;  %v3377_v53 = vpop.f32.mrb[126].mxu0 }
 0x518   :  { %v3378_v54 = vpop.f32.mrb[127].mxu0 }
 0x519   :  { %v3379_v14 = vadd.f32 %v3378_v54, %v3377_v53 }
 0x51b   :  { %v1385_v55 = vpack.c.bf16 %v3379_v14, %v3376_v52 }
 0x51d   :  { %3769 = vmatmul.mubr.bf16.gmra.mrb[92].mxu1 %v1385_v55 }
 0x580   :  { %v3742_v5 = vpop.f32.mrb[64].mxu1 }
 0x581   :  { %v1502_v6 = vadd.f32 %v3742_v5, %v4758_v4  ;;  %v1493_v7 = vpop.f32.mrb[65].mxu1 }
 0x582   :  { %v1494_v8 = vadd.f32 %v4758_v4, %v1493_v7  ;;  %v3743_v22 = vpop.f32.mrb[66].mxu1 }
 0x583   :  { %v1505_v9 = vadd.f32 %v3743_v22, %v4758_v4  ;;  %v1496_v10 = vpop.f32.mrb[67].mxu1  ;;  %v1622_v16 = vmax.f32 %v1502_v6, 0.0 }
 0x584   :  { %v1497_v11 = vadd.f32 %v4758_v4, %v1496_v10  ;;  %v1620_v30 = vmax.f32 %v1494_v8, 0.0 }
 0x585   :  { %v1623_v17 = vmax.f32 %v1505_v9, 0.0 }
 0x586   :  { %v1621_v18 = vmax.f32 %v1497_v11, 0.0 }
 0x587   :  { %v1653_v29 = vpack.c.bf16 %v1623_v17, %v1622_v16 }
 0x588   :  { %v1652_v19 = vpack.c.bf16 %v1621_v18, %v1620_v30 }
 0x58a   :  { %3788 = vmatprep.mubr.bf16.mxu1 %v1652_v19 }
 0x58b   :  { %3789 = vmatmul.mubr.bf16.vlgmr.msra.gmra.mrb[96].mxu1 %v1653_v29 }
 0x590   :  { %v3746_v20 = vpop.f32.mrb[68].mxu1 }
 0x591   :  { %v1518_v21 = vadd.f32 %v3746_v20, %v4758_v4  ;;  %v1509_v23 = vpop.f32.mrb[69].mxu1 }
 0x592   :  { %v1510_v24 = vadd.f32 %v4758_v4, %v1509_v23  ;;  %v3747_v25 = vpop.f32.mrb[70].mxu1 }
 0x593   :  { %v1521_v26 = vadd.f32 %v3747_v25, %v4758_v4  ;;  %v1512_v27 = vpop.f32.mrb[71].mxu1  ;;  %v1626_v31 = vmax.f32 %v1518_v21, 0.0 }
 0x594   :  { %v1513_v28 = vadd.f32 %v4758_v4, %v1512_v27  ;;  %v1624_v63 = vmax.f32 %v1510_v24, 0.0 }
 0x595   :  { %v1627_v32 = vmax.f32 %v1521_v26, 0.0 }
 0x596   :  { %v1625_v43 = vmax.f32 %v1513_v28, 0.0 }
 0x597   :  { %v1655_v62 = vpack.c.bf16 %v1627_v32, %v1626_v31 }
 0x598   :  { %v1654_v46 = vpack.c.bf16 %v1625_v43, %v1624_v63 }
 0x59a   :  { %3792 = vmatprep.mubr.bf16.mxu1 %v1654_v46 }
 0x59b   :  { %3793 = vmatmul.mubr.bf16.gmra.mrb[100].mxu1 %v1655_v62 }
 0x5a0   :  { %v3750_v47 = vpop.f32.mrb[72].mxu1 }
 0x5a1   :  { %v1534_v50 = vadd.f32 %v3750_v47, %v4758_v4  ;;  %v1525_v15 = vpop.f32.mrb[73].mxu1 }
 0x5a2   :  { %v1526_v33 = vadd.f32 %v4758_v4, %v1525_v15  ;;  %v3751_v34 = vpop.f32.mrb[74].mxu1 }
 0x5a3   :  { %v1537_v35 = vadd.f32 %v3751_v34, %v4758_v4  ;;  %v1528_v36 = vpop.f32.mrb[75].mxu1  ;;  %v1630_v38 = vmax.f32 %v1534_v50, 0.0 }
 0x5a4   :  { %v1529_v37 = vadd.f32 %v4758_v4, %v1528_v36  ;;  %v1628_v40 = vmax.f32 %v1526_v33, 0.0 }
 0x5a5   :  { %v1631_v39 = vmax.f32 %v1537_v35, 0.0 }
 0x5a6   :  { %v1629_v41 = vmax.f32 %v1529_v37, 0.0 }
 0x5a7   :  { %v1657_v42 = vpack.c.bf16 %v1631_v39, %v1630_v38 }
 0x5a8   :  { %v1656_v44 = vpack.c.bf16 %v1629_v41, %v1628_v40 }
 0x5aa   :  { %3796 = vmatprep.mubr.bf16.mxu1 %v1656_v44 }
 0x5ab   :  { %3797 = vmatmul.mubr.bf16.gmra.mrb[104].mxu1 %v1657_v42 }
 0x5b0   :  { %v3754_v45 = vpop.f32.mrb[76].mxu1 }
 0x5b1   :  { %v1550_v48 = vadd.f32 %v3754_v45, %v4758_v4  ;;  %v1541_v49 = vpop.f32.mrb[77].mxu1 }
 0x5b2   :  { %v1542_v51 = vadd.f32 %v4758_v4, %v1541_v49  ;;  %v3755_v52 = vpop.f32.mrb[78].mxu1 }
 0x5b3   :  { %v1553_v53 = vadd.f32 %v3755_v52, %v4758_v4  ;;  %v1544_v54 = vpop.f32.mrb[79].mxu1  ;;  %v1634_v55 = vmax.f32 %v1550_v48, 0.0 }
 0x5b4   :  { %v1545_v14 = vadd.f32 %v4758_v4, %v1544_v54  ;;  %v1632_v6 = vmax.f32 %v1542_v51, 0.0 }
 0x5b5   :  { %v1635_v5 = vmax.f32 %v1553_v53, 0.0 }
 0x5b6   :  { %v1633_v7 = vmax.f32 %v1545_v14, 0.0 }
 0x5b7   :  { %v1659_v8 = vpack.c.bf16 %v1635_v5, %v1634_v55 }
 0x5b8   :  { %v1658_v22 = vpack.c.bf16 %v1633_v7, %v1632_v6 }
 0x5ba   :  { %3800 = vmatprep.mubr.bf16.mxu1 %v1658_v22 }
 0x5bb   :  { %3801 = vmatmul.mubr.bf16.gmra.mrb[108].mxu1 %v1659_v8 }
 0x5c0   :  { %v3758_v9 = vpop.f32.mrb[80].mxu1 }
 0x5c1   :  { %v1566_v10 = vadd.f32 %v3758_v9, %v4758_v4  ;;  %v1557_v11 = vpop.f32.mrb[81].mxu1 }
 0x5c2   :  { %v1558_v16 = vadd.f32 %v4758_v4, %v1557_v11  ;;  %v3759_v17 = vpop.f32.mrb[82].mxu1 }
 0x5c3   :  { %v1569_v30 = vadd.f32 %v3759_v17, %v4758_v4  ;;  %v1560_v18 = vpop.f32.mrb[83].mxu1  ;;  %v1638_v19 = vmax.f32 %v1566_v10, 0.0 }
 0x5c4   :  { %v1561_v29 = vadd.f32 %v4758_v4, %v1560_v18  ;;  %v1636_v21 = vmax.f32 %v1558_v16, 0.0 }
 0x5c5   :  { %v1639_v20 = vmax.f32 %v1569_v30, 0.0  ;;  %v4792_v30 = vld [vmem:[#allocation11 + $0x1] ss:$0 sm:$0xff] }
 0x5c6   :  { %v1637_v23 = vmax.f32 %v1561_v29, 0.0 }
 0x5c7   :  { %v1661_v24 = vpack.c.bf16 %v1639_v20, %v1638_v19 }
 0x5c8   :  { %v1660_v25 = vpack.c.bf16 %v1637_v23, %v1636_v21 }
 0x5ca   :  { %3804 = vmatprep.mubr.bf16.mxu1 %v1660_v25 }
 0x5cb   :  { %3805 = vmatmul.mubr.bf16.gmra.mrb[112].mxu1 %v1661_v24 }
 0x5d0   :  { %v3762_v26 = vpop.f32.mrb[84].mxu1 }
 0x5d1   :  { %v1582_v27 = vadd.f32 %v3762_v26, %v4758_v4  ;;  %v1573_v28 = vpop.f32.mrb[85].mxu1 }
 0x5d2   :  { %v1574_v31 = vadd.f32 %v4758_v4, %v1573_v28  ;;  %v3763_v32 = vpop.f32.mrb[86].mxu1 }
 0x5d3   :  { %v1585_v63 = vadd.f32 %v3763_v32, %v4758_v4  ;;  %v1576_v43 = vpop.f32.mrb[87].mxu1  ;;  %v1642_v46 = vmax.f32 %v1582_v27, 0.0 }
 0x5d4   :  { %v1577_v62 = vadd.f32 %v4758_v4, %v1576_v43  ;;  %v1640_v50 = vmax.f32 %v1574_v31, 0.0 }
 0x5d5   :  { %v1643_v47 = vmax.f32 %v1585_v63, 0.0 }
 0x5d6   :  { %v1641_v15 = vmax.f32 %v1577_v62, 0.0 }
 0x5d7   :  { %v1663_v33 = vpack.c.bf16 %v1643_v47, %v1642_v46 }
 0x5d8   :  { %v1662_v34 = vpack.c.bf16 %v1641_v15, %v1640_v50 }
 0x5da   :  { %3808 = vmatprep.mubr.bf16.mxu1 %v1662_v34 }
 0x5db   :  { %3809 = vmatmul.mubr.bf16.gmra.mrb[116].mxu1 %v1663_v33 }
 0x5e0   :  { %v3766_v35 = vpop.f32.mrb[88].mxu1 }
 0x5e1   :  { %v1598_v36 = vadd.f32 %v3766_v35, %v4758_v4  ;;  %v1589_v37 = vpop.f32.mrb[89].mxu1 }
 0x5e2   :  { %v1590_v38 = vadd.f32 %v4758_v4, %v1589_v37  ;;  %v3767_v39 = vpop.f32.mrb[90].mxu1 }
 0x5e3   :  { %v1601_v40 = vadd.f32 %v3767_v39, %v4758_v4  ;;  %v1592_v41 = vpop.f32.mrb[91].mxu1  ;;  %v1646_v44 = vmax.f32 %v1598_v36, 0.0 }
 0x5e4   :  { %v1593_v42 = vadd.f32 %v4758_v4, %v1592_v41  ;;  %v1644_v48 = vmax.f32 %v1590_v38, 0.0 }
 0x5e5   :  { %v1647_v45 = vmax.f32 %v1601_v40, 0.0 }
 0x5e6   :  { %v1645_v49 = vmax.f32 %v1593_v42, 0.0 }
 0x5e7   :  { %v1665_v51 = vpack.c.bf16 %v1647_v45, %v1646_v44 }
 0x5e8   :  { %v1664_v52 = vpack.c.bf16 %v1645_v49, %v1644_v48 }
 0x5ea   :  { %3812 = vmatprep.mubr.bf16.mxu1 %v1664_v52 }
 0x5eb   :  { %3813 = vmatmul.mubr.bf16.gmra.mrb[120].mxu1 %v1665_v51 }
 0x5f0   :  { %v3770_v53 = vpop.f32.mrb[92].mxu1 }
 0x5f1   :  { %v1614_v54 = vadd.f32 %v3770_v53, %v4758_v4  ;;  %v1605_v14 = vpop.f32.mrb[93].mxu1 }
 0x5f2   :  { %v1606_v55 = vadd.f32 %v4758_v4, %v1605_v14  ;;  %v3771_v5 = vpop.f32.mrb[94].mxu1 }
 0x5f3   :  { %v1617_v6 = vadd.f32 %v3771_v5, %v4758_v4  ;;  %v1608_v7 = vpop.f32.mrb[95].mxu1  ;;  %v1650_v22 = vmax.f32 %v1614_v54, 0.0 }
 0x5f4   :  { %v1609_v8 = vadd.f32 %v4758_v4, %v1608_v7  ;;  %v1648_v10 = vmax.f32 %v1606_v55, 0.0 }
 0x5f5   :  { %v1651_v9 = vmax.f32 %v1617_v6, 0.0 }
 0x5f6   :  { %v1649_v11 = vmax.f32 %v1609_v8, 0.0 }
 0x5f7   :  { %v1667_v16 = vpack.c.bf16 %v1651_v9, %v1650_v22 }
 0x5f8   :  { %v1666_v17 = vpack.c.bf16 %v1649_v11, %v1648_v10 }
 0x5fa   :  { %3816 = vmatprep.mubr.bf16.mxu1 %v1666_v17 }
 0x5fb   :  { %3817 = vmatmul.mubr.bf16.gmra.mrb[124].mxu1 %v1667_v16 }
 0x65e   :  { %v3790_v18 = vpop.f32.mrb[96].mxu1 }
 0x65f   :  { %v1784_v29 = vadd.f32 %v3790_v18, %v4792_v30  ;;  %v1775_v19 = vpop.f32.mrb[97].mxu1 }
 0x660   :  { %v1776_v20 = vadd.f32 %v4792_v30, %v1775_v19  ;;  %v3791_v21 = vpop.f32.mrb[98].mxu1 }
 0x661   :  { %v1787_v23 = vadd.f32 %v3791_v21, %v4792_v30  ;;  %v1778_v4 = vpop.f32.mrb[99].mxu1  ;;  %v1904_v25 = vmax.f32 %v1784_v29, 0.0 }
 0x662   :  { %v1779_v24 = vadd.f32 %v4792_v30, %v1778_v4  ;;  %v1902_v27 = vmax.f32 %v1776_v20, 0.0 }
 0x663   :  { %v1905_v26 = vmax.f32 %v1787_v23, 0.0 }
 0x664   :  { %v1903_v28 = vmax.f32 %v1779_v24, 0.0 }
 0x665   :  { %v1935_v31 = vpack.c.bf16 %v1905_v26, %v1904_v25 }
 0x666   :  { %v1934_v32 = vpack.c.bf16 %v1903_v28, %v1902_v27 }
 0x66e   :  { %v3794_v63 = vpop.f32.mrb[100].mxu1 }
 0x66f   :  { %v1800_v43 = vadd.f32 %v3794_v63, %v4792_v30  ;;  %v1791_v62 = vpop.f32.mrb[101].mxu1 }
 0x670   :  { %v1792_v46 = vadd.f32 %v4792_v30, %v1791_v62  ;;  %v3795_v47 = vpop.f32.mrb[102].mxu1 }
 0x671   :  { %v1803_v50 = vadd.f32 %v3795_v47, %v4792_v30  ;;  %v1794_v15 = vpop.f32.mrb[103].mxu1  ;;  %v1908_v34 = vmax.f32 %v1800_v43, 0.0 }
 0x672   :  { %v1795_v33 = vadd.f32 %v4792_v30, %v1794_v15  ;;  %v1906_v36 = vmax.f32 %v1792_v46, 0.0 }
 0x673   :  { %v1909_v35 = vmax.f32 %v1803_v50, 0.0 }
 0x674   :  { %v1907_v37 = vmax.f32 %v1795_v33, 0.0 }
 0x675   :  { %v4802_v38 = vpack.c.bf16 %v1909_v35, %v1908_v34 }
 0x676   :  { %v1936_v39 = vpack.c.bf16 %v1907_v37, %v1906_v36 }
 0x67e   :  { %v3798_v40 = vpop.f32.mrb[104].mxu1 }
 0x67f   :  { %v1816_v41 = vadd.f32 %v3798_v40, %v4792_v30  ;;  %v1807_v42 = vpop.f32.mrb[105].mxu1 }
 0x680   :  { %v1808_v44 = vadd.f32 %v4792_v30, %v1807_v42  ;;  %v3799_v45 = vpop.f32.mrb[106].mxu1 }
 0x681   :  { %v1819_v48 = vadd.f32 %v3799_v45, %v4792_v30  ;;  %v1810_v49 = vpop.f32.mrb[107].mxu1  ;;  %v1912_v52 = vmax.f32 %v1816_v41, 0.0 }
 0x682   :  { %v1811_v51 = vadd.f32 %v4792_v30, %v1810_v49  ;;  %v1910_v54 = vmax.f32 %v1808_v44, 0.0 }
 0x683   :  { %v1913_v53 = vmax.f32 %v1819_v48, 0.0 }
 0x684   :  { %v1911_v14 = vmax.f32 %v1811_v51, 0.0 }
 0x685   :  { %v4808_v55 = vpack.c.bf16 %v1913_v53, %v1912_v52 }
 0x686   :  { %v4810_v5 = vpack.c.bf16 %v1911_v14, %v1910_v54 }
 0x68e   :  { %v3802_v6 = vpop.f32.mrb[108].mxu1 }
 0x68f   :  { %v1832_v7 = vadd.f32 %v3802_v6, %v4792_v30  ;;  %v1823_v8 = vpop.f32.mrb[109].mxu1 }
 0x690   :  { %v1824_v22 = vadd.f32 %v4792_v30, %v1823_v8  ;;  %v3803_v9 = vpop.f32.mrb[110].mxu1 }
 0x691   :  { %v1835_v10 = vadd.f32 %v3803_v9, %v4792_v30  ;;  %v1826_v11 = vpop.f32.mrb[111].mxu1  ;;  %v1916_v17 = vmax.f32 %v1832_v7, 0.0 }
 0x692   :  { %v1827_v16 = vadd.f32 %v4792_v30, %v1826_v11  ;;  %v1914_v29 = vmax.f32 %v1824_v22, 0.0 }
 0x693   :  { %v1917_v18 = vmax.f32 %v1835_v10, 0.0 }
 0x694   :  { %v1915_v19 = vmax.f32 %v1827_v16, 0.0 }
 0x695   :  { %v4816_v20 = vpack.c.bf16 %v1917_v18, %v1916_v17 }
 0x696   :  { %v4818_v21 = vpack.c.bf16 %v1915_v19, %v1914_v29 }
 0x69e   :  { %v3806_v23 = vpop.f32.mrb[112].mxu1 }
 0x69f   :  { %v1848_v4 = vadd.f32 %v3806_v23, %v4792_v30  ;;  %v1839_v24 = vpop.f32.mrb[113].mxu1 }
 0x6a0   :  { %v1840_v25 = vadd.f32 %v4792_v30, %v1839_v24  ;;  %v3807_v26 = vpop.f32.mrb[114].mxu1 }
 0x6a1   :  { %v1851_v27 = vadd.f32 %v3807_v26, %v4792_v30  ;;  %v1842_v28 = vpop.f32.mrb[115].mxu1  ;;  %v1920_v43 = vmax.f32 %v1848_v4, 0.0 }
 0x6a2   :  { %v1843_v63 = vadd.f32 %v4792_v30, %v1842_v28  ;;  %v1918_v46 = vmax.f32 %v1840_v25, 0.0 }
 0x6a3   :  { %v1921_v62 = vmax.f32 %v1851_v27, 0.0 }
 0x6a4   :  { %v1919_v47 = vmax.f32 %v1843_v63, 0.0 }
 0x6a5   :  { %v1943_v50 = vpack.c.bf16 %v1921_v62, %v1920_v43  ;;  %v4070_v43 = vld [vmem:[#allocation7 + $0x88] sm:$0xff]   ;;  %v4071_v62 = vld [vmem:[#allocation7 + $0x90] sm:$0xff]  }
 0x6a6   :  { %v1942_v15 = vpack.c.bf16 %v1919_v47, %v1918_v46  ;;  %v4075_v46 = vld [vmem:[#allocation7 + $0xb0] sm:$0xff]   ;;  %v4076_v47 = vld [vmem:[#allocation7 + $0xb8] sm:$0xff]  }
 0x6a8   :  { %3428 = vmatprep.subr.bf16.mxu0 %v1942_v15  ;;  %v4129_v15 = vld [vmem:[#allocation2 + $0xd4] ss:$8 sps:$4 sm:$0xff]  }
 0x6a9   :  { %3429 = vmatpush3.bf16.msra.mxu0 %v1934_v32 }
 0x6aa   :  { %3430 = vmatprep.subr.bf16.mxu0 %v1943_v50  ;;  %v4128_v50 = vld [vmem:[#allocation2 + $0xc0] ss:$8 sps:$4 sm:$0xff]  }
 0x6ad   :  { %3431 = vmatpush3.bf16.msra.mxu0 %v1935_v31 }
 0x6ae   :  { %v3810_v33 = vpop.f32.mrb[116].mxu1 }
 0x6af   :  { %v1864_v34 = vadd.f32 %v3810_v33, %v4792_v30  ;;  %v1855_v35 = vpop.f32.mrb[117].mxu1  ;;  %v4130_v33 = vld [vmem:[#allocation2 + $0xd0] ss:$8 sps:$4 sm:$0xff]  }
 0x6b0   :  { %v1856_v36 = vadd.f32 %v4792_v30, %v1855_v35  ;;  %v3811_v37 = vpop.f32.mrb[118].mxu1  ;;  %v4132_v35 = vld [vmem:[#allocation2 + $0xe0] ss:$8 sps:$4 sm:$0xff]  }
 0x6b1   :  { %v1867_v40 = vadd.f32 %v3811_v37, %v4792_v30  ;;  %v1858_v41 = vpop.f32.mrb[119].mxu1  ;;  %v1924_v44 = vmax.f32 %v1864_v34, 0.0  ;;  %v4131_v34 = vld [vmem:[#allocation2 + $0xe4] ss:$8 sps:$4 sm:$0xff]   ;;  %v4134_v37 = vld [vmem:[#allocation2 + $0xf0] ss:$8 sps:$4 sm:$0xff]  }
 0x6b2   :  { %v1859_v42 = vadd.f32 %v4792_v30, %v1858_v41  ;;  %v1922_v48 = vmax.f32 %v1856_v36, 0.0  ;;  %v4133_v36 = vld [vmem:[#allocation2 + $0xf4] ss:$8 sps:$4 sm:$0xff]   ;;  %v4077_v41 = vld [vmem:[#allocation10 + $0x80] sm:$0xff]  }
 0x6b3   :  { %v1925_v45 = vmax.f32 %v1867_v40, 0.0 }
 0x6b4   :  { %v1923_v49 = vmax.f32 %v1859_v42, 0.0 }
 0x6b5   :  { %v1945_v51 = vpack.c.bf16 %v1925_v45, %v1924_v44 }
 0x6b6   :  { %v1944_v32 = vpack.c.bf16 %v1923_v49, %v1922_v48 }
 0x6b8   :  { %3432 = vmatprep.subr.bf16.mxu0 %v1944_v32 }
 0x6b9   :  { %3433 = vmatpush3.bf16.msra.mxu0 %v1936_v39 }
 0x6ba   :  { %3434 = vmatprep.subr.bf16.mxu0 %v1945_v51 }
 0x6bd   :  { %3435 = vmatpush3.bf16.msra.mxu0 %v4802_v38 }
 0x6be   :  { %v3814_v31 = vpop.f32.mrb[120].mxu1 }
 0x6bf   :  { %v1880_v52 = vadd.f32 %v3814_v31, %v4792_v30  ;;  %v1871_v53 = vpop.f32.mrb[121].mxu1 }
 0x6c0   :  { %v1872_v54 = vadd.f32 %v4792_v30, %v1871_v53  ;;  %v3815_v14 = vpop.f32.mrb[122].mxu1 }
 0x6c1   :  { %v1883_v6 = vadd.f32 %v3815_v14, %v4792_v30  ;;  %v1874_v7 = vpop.f32.mrb[123].mxu1  ;;  %v1928_v22 = vmax.f32 %v1880_v52, 0.0 }
 0x6c2   :  { %v1875_v8 = vadd.f32 %v4792_v30, %v1874_v7  ;;  %v1926_v10 = vmax.f32 %v1872_v54, 0.0  ;;  %v4078_v7 = vld [vmem:[#allocation10 + $0x88] sm:$0xff]  }
 0x6c3   :  { %v1929_v9 = vmax.f32 %v1883_v6, 0.0 }
 0x6c4   :  { %v1927_v11 = vmax.f32 %v1875_v8, 0.0 }
 0x6c5   :  { %v1947_v39 = vpack.c.bf16 %v1929_v9, %v1928_v22 }
 0x6c6   :  { %v1946_v16 = vpack.c.bf16 %v1927_v11, %v1926_v10  ;;  %v4079_v11 = vld [vmem:[#allocation10 + $0x90] sm:$0xff]  }
 0x6c8   :  { %3436 = vmatprep.subr.bf16.mxu0 %v1946_v16 }
 0x6c9   :  { %3437 = vmatpush3.bf16.msra.mxu0 %v4810_v5 }
 0x6ca   :  { %3438 = vmatprep.subr.bf16.mxu0 %v1947_v39 }
 0x6cd   :  { %3439 = vmatpush3.bf16.msra.mxu0 %v4808_v55  ;;  %v4069_v55 = vld [vmem:[#allocation7 + $0x80] sm:$0xff]  }
 0x6ce   :  { %v3818_v38 = vpop.f32.mrb[124].mxu1  ;;  %3820 = vmatprep.subr.bf16.mxu1 %v4069_v55 }
 0x6cf   :  { %v1896_v17 = vadd.f32 %v3818_v38, %v4792_v30  ;;  %v1887_v18 = vpop.f32.mrb[125].mxu1  ;;  %3821 = vmatpush3.bf16.msra.mxu1 %v4069_v55 }
 0x6d0   :  { %v1888_v29 = vadd.f32 %v4792_v30, %v1887_v18  ;;  %v3819_v19 = vpop.f32.mrb[126].mxu1  ;;  %3822 = vmatprep.subr.bf16.mxu1 %v4070_v43 }
 0x6d1   :  { %v1899_v23 = vadd.f32 %v3819_v19, %v4792_v30  ;;  %v1890_v4 = vpop.f32.mrb[127].mxu1  ;;  %v1932_v25 = vmax.f32 %v1896_v17, 0.0  ;;  %v4080_v17 = vld [vmem:[#allocation10 + $0x98] sm:$0xff]  }
 0x6d2   :  { %v1891_v24 = vadd.f32 %v4792_v30, %v1890_v4  ;;  %v1930_v27 = vmax.f32 %v1888_v29, 0.0  ;;  %v4072_v30 = vld [vmem:[#allocation7 + $0x98] sm:$0xff]   ;;  %v4081_v4 = vld [vmem:[#allocation10 + $0xa0] sm:$0xff]  }
 0x6d3   :  { %v1933_v26 = vmax.f32 %v1899_v23, 0.0  ;;  %3823 = vmatpush3.bf16.msra.mxu1 %v4070_v43 }
 0x6d4   :  { %v1931_v28 = vmax.f32 %v1891_v24, 0.0  ;;  %3824 = vmatprep.subr.bf16.mxu1 %v4071_v62 }
 0x6d5   :  { %v1949_v5 = vpack.c.bf16 %v1933_v26, %v1932_v25 }
 0x6d6   :  { %v1948_v63 = vpack.c.bf16 %v1931_v28, %v1930_v27  ;;  %v4082_v27 = vld [vmem:[#allocation10 + $0xa8] sm:$0xff]  }
 0x6d7   :  { %3825 = vmatpush3.bf16.msra.mxu1 %v4071_v62 }
 0x6d8   :  { %3440 = vmatprep.subr.bf16.mxu0 %v1948_v63  ;;  %3826 = vmatprep.subr.bf16.mxu1 %v4072_v30 }
 0x6d9   :  { %3441 = vmatpush3.bf16.msra.mxu0 %v4818_v21  ;;  %v4127_v21 = vld [vmem:[#allocation2 + $0xc4] ss:$8 sps:$4 sm:$0xff]  }
 0x6da   :  { %3442 = vmatprep.subr.bf16.mxu0 %v1949_v5 }
 0x6db   :  { %3827 = vmatpush3.bf16.msra.mxu1 %v4072_v30 }
 0x6dd   :  { %3443 = vmatpush3.bf16.msra.mxu0 %v4816_v20  ;;  %v4126_v20 = vld [vmem:[#allocation2 + $0xb0] ss:$8 sps:$4 sm:$0xff]  }
 0x6e0   :  { %1983 = vmatmul.mubr.bf16.vlgmr.msra.gmra.mrb[128].mxu0 %v4703_v2  ;;  %v4116_v2 = vld [vmem:[#allocation2 + $0x60] ss:$8 sps:$4 sm:$0xff]  }
 0x6e1   :  { %1990 = vmatprep.mubr.bf16.mxu0 %v4706_v56  ;;  %v4117_v56 = vld [vmem:[#allocation2 + $0x74] ss:$8 sps:$4 sm:$0xff]  }
 0x6e8   :  { %1991 = vmatmul.mubr.bf16.gmra.mrb[132].mxu0 %v4709_v13  ;;  %v4118_v13 = vld [vmem:[#allocation2 + $0x70] ss:$8 sps:$4 sm:$0xff]  }
 0x6e9   :  { %1998 = vmatprep.mubr.bf16.mxu0 %v4712_v57  ;;  %v4119_v57 = vld [vmem:[#allocation2 + $0x84] ss:$8 sps:$4 sm:$0xff]  }
 0x6f0   :  { %1999 = vmatmul.mubr.bf16.gmra.mrb[136].mxu0 %v4715_v12  ;;  %v4120_v12 = vld [vmem:[#allocation2 + $0x80] ss:$8 sps:$4 sm:$0xff]  }
 0x6f1   :  { %2006 = vmatprep.mubr.bf16.mxu0 %v4718_v58  ;;  %v4121_v58 = vld [vmem:[#allocation2 + $0x94] ss:$8 sps:$4 sm:$0xff]  }
 0x6f8   :  { %2007 = vmatmul.mubr.bf16.gmra.mrb[140].mxu0 %v4721_v59  ;;  %v4122_v59 = vld [vmem:[#allocation2 + $0x90] ss:$8 sps:$4 sm:$0xff]  }
 0x6f9   :  { %2014 = vmatprep.mubr.bf16.mxu0 %v4724_v60  ;;  %v4123_v60 = vld [vmem:[#allocation2 + $0xa4] ss:$8 sps:$4 sm:$0xff]  }
 0x700   :  { %2015 = vmatmul.mubr.bf16.gmra.mrb[144].mxu0 %v4727_v61  ;;  %v4124_v61 = vld [vmem:[#allocation2 + $0xa0] ss:$8 sps:$4 sm:$0xff]  }
 0x701   :  { %2022 = vmatprep.mubr.bf16.mxu0 %v4730_v0  ;;  %v4125_v0 = vld [vmem:[#allocation2 + $0xb4] ss:$8 sps:$4 sm:$0xff]  }
 0x708   :  { %2023 = vmatmul.mubr.bf16.gmra.mrb[148].mxu0 %v4733_v1  ;;  %v4073_v1 = vld [vmem:[#allocation7 + $0xa0] sm:$0xff]  }
 0x709   :  { %2030 = vmatprep.mubr.bf16.mxu0 %v4736_v3  ;;  %3828 = vmatprep.subr.bf16.mxu1 %v4073_v1  ;;  %v4074_v3 = vld [vmem:[#allocation7 + $0xa8] sm:$0xff]  }
 0x70a   :  { %3829 = vmatpush3.bf16.msra.mxu1 %v4073_v1 }
 0x70b   :  { %3830 = vmatprep.subr.bf16.mxu1 %v4074_v3 }
 0x70e   :  { %3831 = vmatpush3.bf16.msra.mxu1 %v4074_v3 }
 0x70f   :  { %3832 = vmatprep.subr.bf16.mxu1 %v4075_v46 }
 0x710   :  { %2031 = vmatmul.mubr.bf16.gmra.mrb[152].mxu0 %v4116_v2 }
 0x711   :  { %2038 = vmatprep.mubr.bf16.mxu0 %v4117_v56 }
 0x712   :  { %3833 = vmatpush3.bf16.msra.mxu1 %v4075_v46 }
 0x713   :  { %3834 = vmatprep.subr.bf16.mxu1 %v4076_v47 }
 0x716   :  { %3835 = vmatpush3.bf16.msra.mxu1 %v4076_v47 }
 0x717   :  { %3868 = vmatprep.subr.bf16.mxu1 %v4077_v41 }
 0x718   :  { %2039 = vmatmul.mubr.bf16.gmra.mrb[156].mxu0 %v4118_v13 }
 0x719   :  { %2046 = vmatprep.mubr.bf16.mxu0 %v4119_v57 }
 0x720   :  { %2047 = vmatmul.mubr.bf16.gmra.mrb[160].mxu0 %v4120_v12 }
 0x721   :  { %2054 = vmatprep.mubr.bf16.mxu0 %v4121_v58 }
 0x728   :  { %2055 = vmatmul.mubr.bf16.gmra.mrb[164].mxu0 %v4122_v59 }
 0x729   :  { %2062 = vmatprep.mubr.bf16.mxu0 %v4123_v60 }
 0x730   :  { %2063 = vmatmul.mubr.bf16.gmra.mrb[168].mxu0 %v4124_v61 }
 0x731   :  { %2070 = vmatprep.mubr.bf16.mxu0 %v4125_v0 }
 0x738   :  { %2071 = vmatmul.mubr.bf16.gmra.mrb[172].mxu0 %v4126_v20 }
 0x739   :  { %2078 = vmatprep.mubr.bf16.mxu0 %v4127_v21 }
 0x740   :  { %2079 = vmatmul.mubr.bf16.gmra.mrb[176].mxu0 %v4128_v50 }
 0x741   :  { %2086 = vmatprep.mubr.bf16.mxu0 %v4129_v15 }
 0x748   :  { %2087 = vmatmul.mubr.bf16.gmra.mrb[180].mxu0 %v4130_v33 }
 0x749   :  { %2094 = vmatprep.mubr.bf16.mxu0 %v4131_v34 }
 0x750   :  { %2095 = vmatmul.mubr.bf16.gmra.mrb[184].mxu0 %v4132_v35 }
 0x751   :  { %2102 = vmatprep.mubr.bf16.mxu0 %v4133_v36 }
 0x758   :  { %2103 = vmatmul.mubr.bf16.gmra.mrb[188].mxu0 %v4134_v37 }
 0x7b3   :  { %v3444_v40 = vpop.f32.mrb[128].mxu0 }
 0x7b4   :  { %v3445_v42 = vpop.f32.mrb[129].mxu0 }
 0x7b5   :  { %v3446_v44 = vadd.f32 %v3445_v42, %v3444_v40  ;;  %v3447_v45 = vpop.f32.mrb[130].mxu0 }
 0x7b6   :  { %v3448_v48 = vpop.f32.mrb[131].mxu0 }
 0x7b7   :  { %v3449_v49 = vadd.f32 %v3448_v48, %v3447_v45 }
 0x7b9   :  { %v2111_v51 = vpack.c.bf16 %v3449_v49, %v3446_v44 }
 0x7bb   :  { %v3450_v32 = vpop.f32.mrb[132].mxu0  ;;  %3836 = vmatprep.mubr.bf16.mxu1 %v2111_v51 }
 0x7bc   :  { %v3451_v31 = vpop.f32.mrb[133].mxu0 }
 0x7bd   :  { %v3452_v52 = vadd.f32 %v3451_v31, %v3450_v32  ;;  %v3453_v53 = vpop.f32.mrb[134].mxu0 }
 0x7be   :  { %v3454_v54 = vpop.f32.mrb[135].mxu0 }
 0x7bf   :  { %v3455_v14 = vadd.f32 %v3454_v54, %v3453_v53 }
 0x7c1   :  { %v2112_v6 = vpack.c.bf16 %v3455_v14, %v3452_v52 }
 0x7c3   :  { %v3456_v8 = vpop.f32.mrb[136].mxu0  ;;  %3837 = vmatmul.mubr.bf16.vlgmr.msra.gmra.mrb[128].mxu1 %v2112_v6 }
 0x7c4   :  { %v3457_v22 = vpop.f32.mrb[137].mxu0  ;;  %3869 = vmatpush3.bf16.msra.mxu1 %v4077_v41 }
 0x7c5   :  { %v3458_v9 = vadd.f32 %v3457_v22, %v3456_v8  ;;  %v3459_v10 = vpop.f32.mrb[138].mxu0  ;;  %3870 = vmatprep.subr.bf16.mxu1 %v4078_v7 }
 0x7c6   :  { %v3460_v39 = vpop.f32.mrb[139].mxu0 }
 0x7c7   :  { %v3461_v16 = vadd.f32 %v3460_v39, %v3459_v10 }
 0x7c8   :  { %3871 = vmatpush3.bf16.msra.mxu1 %v4078_v7 }
 0x7c9   :  { %v2113_v38 = vpack.c.bf16 %v3461_v16, %v3458_v9  ;;  %3872 = vmatprep.subr.bf16.mxu1 %v4079_v11 }
 0x7cb   :  { %v3462_v18 = vpop.f32.mrb[140].mxu0  ;;  %3840 = vmatprep.mubr.bf16.mxu1 %v2113_v38 }
 0x7cc   :  { %v3463_v29 = vpop.f32.mrb[141].mxu0  ;;  %3873 = vmatpush3.bf16.msra.mxu1 %v4079_v11 }
 0x7cd   :  { %v3464_v19 = vadd.f32 %v3463_v29, %v3462_v18  ;;  %v3465_v23 = vpop.f32.mrb[142].mxu0  ;;  %3874 = vmatprep.subr.bf16.mxu1 %v4080_v17 }
 0x7ce   :  { %v3466_v24 = vpop.f32.mrb[143].mxu0 }
 0x7cf   :  { %v3467_v25 = vadd.f32 %v3466_v24, %v3465_v23 }
 0x7d0   :  { %3875 = vmatpush3.bf16.msra.mxu1 %v4080_v17 }
 0x7d1   :  { %v2114_v26 = vpack.c.bf16 %v3467_v25, %v3464_v19  ;;  %3876 = vmatprep.subr.bf16.mxu1 %v4081_v4 }
 0x7d3   :  { %v3468_v28 = vpop.f32.mrb[144].mxu0  ;;  %3841 = vmatmul.mubr.bf16.gmra.mrb[132].mxu1 %v2114_v26  ;;  %v4083_v26 = vld [vmem:[#allocation10 + $0xb0] sm:$0xff]  }
 0x7d4   :  { %v3469_v5 = vpop.f32.mrb[145].mxu0  ;;  %3877 = vmatpush3.bf16.msra.mxu1 %v4081_v4 }
 0x7d5   :  { %v3470_v63 = vadd.f32 %v3469_v5, %v3468_v28  ;;  %v3471_v55 = vpop.f32.mrb[146].mxu0  ;;  %3878 = vmatprep.subr.bf16.mxu1 %v4082_v27  ;;  %v4084_v5 = vld [vmem:[#allocation10 + $0xb8] sm:$0xff]  }
 0x7d6   :  { %v3472_v43 = vpop.f32.mrb[147].mxu0 }
 0x7d7   :  { %v3473_v62 = vadd.f32 %v3472_v43, %v3471_v55 }
 0x7d8   :  { %3879 = vmatpush3.bf16.msra.mxu1 %v4082_v27 }
 0x7d9   :  { %v2115_v30 = vpack.c.bf16 %v3473_v62, %v3470_v63  ;;  %3880 = vmatprep.subr.bf16.mxu1 %v4083_v26 }
 0x7db   :  { %v3474_v2 = vpop.f32.mrb[148].mxu0  ;;  %3844 = vmatprep.mubr.bf16.mxu1 %v2115_v30 }
 0x7dc   :  { %v3475_v56 = vpop.f32.mrb[149].mxu0  ;;  %3881 = vmatpush3.bf16.msra.mxu1 %v4083_v26 }
 0x7dd   :  { %v3476_v13 = vadd.f32 %v3475_v56, %v3474_v2  ;;  %v3477_v57 = vpop.f32.mrb[150].mxu0  ;;  %3882 = vmatprep.subr.bf16.mxu1 %v4084_v5 }
 0x7de   :  { %v3478_v12 = vpop.f32.mrb[151].mxu0 }
 0x7df   :  { %v3479_v58 = vadd.f32 %v3478_v12, %v3477_v57 }
 0x7e0   :  { %3883 = vmatpush3.bf16.msra.mxu1 %v4084_v5 }
 0x7e1   :  { %v2116_v59 = vpack.c.bf16 %v3479_v58, %v3476_v13 }
 0x7e3   :  { %v3480_v60 = vpop.f32.mrb[152].mxu0  ;;  %3845 = vmatmul.mubr.bf16.gmra.mrb[136].mxu1 %v2116_v59 }
 0x7e4   :  { %v3481_v61 = vpop.f32.mrb[153].mxu0 }
 0x7e5   :  { %v3482_v0 = vadd.f32 %v3481_v61, %v3480_v60  ;;  %v3483_v1 = vpop.f32.mrb[154].mxu0 }
 0x7e6   :  { %v3484_v3 = vpop.f32.mrb[155].mxu0 }
 0x7e7   :  { %v3485_v20 = vadd.f32 %v3484_v3, %v3483_v1 }
 0x7e9   :  { %v2117_v21 = vpack.c.bf16 %v3485_v20, %v3482_v0 }
 0x7eb   :  { %v3486_v46 = vpop.f32.mrb[156].mxu0  ;;  %3848 = vmatprep.mubr.bf16.mxu1 %v2117_v21 }
 0x7ec   :  { %v3487_v47 = vpop.f32.mrb[157].mxu0 }
 0x7ed   :  { %v3488_v50 = vadd.f32 %v3487_v47, %v3486_v46  ;;  %v3489_v15 = vpop.f32.mrb[158].mxu0  ;;  %v4853_v47 = vld [vmem:[#allocation8 + $0x2] ss:$0 sm:$0xff] }
 0x7ee   :  { %v3490_v33 = vpop.f32.mrb[159].mxu0 }
 0x7ef   :  { %v3491_v34 = vadd.f32 %v3490_v33, %v3489_v15 }
 0x7f1   :  { %v2118_v35 = vpack.c.bf16 %v3491_v34, %v3488_v50 }
 0x7f3   :  { %v3492_v36 = vpop.f32.mrb[160].mxu0  ;;  %3849 = vmatmul.mubr.bf16.gmra.mrb[140].mxu1 %v2118_v35 }
 0x7f4   :  { %v3493_v37 = vpop.f32.mrb[161].mxu0 }
 0x7f5   :  { %v3494_v40 = vadd.f32 %v3493_v37, %v3492_v36  ;;  %v3495_v41 = vpop.f32.mrb[162].mxu0 }
 0x7f6   :  { %v3496_v42 = vpop.f32.mrb[163].mxu0 }
 0x7f7   :  { %v3497_v44 = vadd.f32 %v3496_v42, %v3495_v41 }
 0x7f9   :  { %v2119_v45 = vpack.c.bf16 %v3497_v44, %v3494_v40 }
 0x7fb   :  { %v3498_v48 = vpop.f32.mrb[164].mxu0  ;;  %3852 = vmatprep.mubr.bf16.mxu1 %v2119_v45 }
 0x7fc   :  { %v3499_v49 = vpop.f32.mrb[165].mxu0 }
 0x7fd   :  { %v3500_v51 = vadd.f32 %v3499_v49, %v3498_v48  ;;  %v3501_v32 = vpop.f32.mrb[166].mxu0 }
 0x7fe   :  { %v3502_v31 = vpop.f32.mrb[167].mxu0 }
 0x7ff   :  { %v3503_v52 = vadd.f32 %v3502_v31, %v3501_v32 }
 0x801   :  { %v2120_v53 = vpack.c.bf16 %v3503_v52, %v3500_v51 }
 0x803   :  { %3853 = vmatmul.mubr.bf16.gmra.mrb[144].mxu1 %v2120_v53  ;;  %v3504_v54 = vpop.f32.mrb[168].mxu0 }
 0x804   :  { %v3505_v14 = vpop.f32.mrb[169].mxu0 }
 0x805   :  { %v3506_v6 = vadd.f32 %v3505_v14, %v3504_v54  ;;  %v3507_v7 = vpop.f32.mrb[170].mxu0 }
 0x806   :  { %v3508_v8 = vpop.f32.mrb[171].mxu0 }
 0x807   :  { %v3509_v22 = vadd.f32 %v3508_v8, %v3507_v7 }
 0x809   :  { %v2121_v9 = vpack.c.bf16 %v3509_v22, %v3506_v6 }
 0x80b   :  { %v3510_v10 = vpop.f32.mrb[172].mxu0  ;;  %3856 = vmatprep.mubr.bf16.mxu1 %v2121_v9 }
 0x80c   :  { %v3511_v11 = vpop.f32.mrb[173].mxu0 }
 0x80d   :  { %v3512_v39 = vadd.f32 %v3511_v11, %v3510_v10  ;;  %v3513_v16 = vpop.f32.mrb[174].mxu0 }
 0x80e   :  { %v3514_v38 = vpop.f32.mrb[175].mxu0 }
 0x80f   :  { %v3515_v17 = vadd.f32 %v3514_v38, %v3513_v16 }
 0x811   :  { %v2122_v18 = vpack.c.bf16 %v3515_v17, %v3512_v39 }
 0x813   :  { %3857 = vmatmul.mubr.bf16.gmra.mrb[148].mxu1 %v2122_v18  ;;  %v3516_v29 = vpop.f32.mrb[176].mxu0 }
 0x814   :  { %v3517_v19 = vpop.f32.mrb[177].mxu0 }
 0x815   :  { %v3518_v23 = vadd.f32 %v3517_v19, %v3516_v29  ;;  %v3519_v4 = vpop.f32.mrb[178].mxu0 }
 0x816   :  { %v3520_v24 = vpop.f32.mrb[179].mxu0 }
 0x817   :  { %v3521_v25 = vadd.f32 %v3520_v24, %v3519_v4 }
 0x819   :  { %v2123_v27 = vpack.c.bf16 %v3521_v25, %v3518_v23 }
 0x81b   :  { %v3522_v28 = vpop.f32.mrb[180].mxu0  ;;  %3860 = vmatprep.mubr.bf16.mxu1 %v2123_v27 }
 0x81c   :  { %v3523_v63 = vpop.f32.mrb[181].mxu0 }
 0x81d   :  { %v3524_v55 = vadd.f32 %v3523_v63, %v3522_v28  ;;  %v3525_v43 = vpop.f32.mrb[182].mxu0 }
 0x81e   :  { %v3526_v62 = vpop.f32.mrb[183].mxu0 }
 0x81f   :  { %v3527_v30 = vadd.f32 %v3526_v62, %v3525_v43 }
 0x821   :  { %v2124_v2 = vpack.c.bf16 %v3527_v30, %v3524_v55 }
 0x823   :  { %3861 = vmatmul.mubr.bf16.gmra.mrb[152].mxu1 %v2124_v2  ;;  %v3528_v56 = vpop.f32.mrb[184].mxu0 }
 0x824   :  { %v3529_v13 = vpop.f32.mrb[185].mxu0 }
 0x825   :  { %v3530_v57 = vadd.f32 %v3529_v13, %v3528_v56  ;;  %v3531_v12 = vpop.f32.mrb[186].mxu0 }
 0x826   :  { %v3532_v58 = vpop.f32.mrb[187].mxu0 }
 0x827   :  { %v3533_v59 = vadd.f32 %v3532_v58, %v3531_v12 }
 0x829   :  { %v2125_v60 = vpack.c.bf16 %v3533_v59, %v3530_v57 }
 0x82b   :  { %v3534_v61 = vpop.f32.mrb[188].mxu0  ;;  %3864 = vmatprep.mubr.bf16.mxu1 %v2125_v60 }
 0x82c   :  { %v3535_v0 = vpop.f32.mrb[189].mxu0 }
 0x82d   :  { %v3536_v1 = vadd.f32 %v3535_v0, %v3534_v61  ;;  %v3537_v3 = vpop.f32.mrb[190].mxu0 }
 0x82e   :  { %v3538_v20 = vpop.f32.mrb[191].mxu0 }
 0x82f   :  { %v3539_v21 = vadd.f32 %v3538_v20, %v3537_v3 }
 0x831   :  { %v2126_v46 = vpack.c.bf16 %v3539_v21, %v3536_v1 }
 0x833   :  { %3865 = vmatmul.mubr.bf16.gmra.mrb[156].mxu1 %v2126_v46 }
 0x896   :  { %v3838_v50 = vpop.f32.mrb[128].mxu1 }
 0x897   :  { %v2243_v15 = vadd.f32 %v3838_v50, %v4853_v47  ;;  %v2234_v33 = vpop.f32.mrb[129].mxu1 }
 0x898   :  { %v2235_v34 = vadd.f32 %v4853_v47, %v2234_v33  ;;  %v3839_v35 = vpop.f32.mrb[130].mxu1 }
 0x899   :  { %v2246_v36 = vadd.f32 %v3839_v35, %v4853_v47  ;;  %v2237_v37 = vpop.f32.mrb[131].mxu1  ;;  %v2363_v41 = vmax.f32 %v2243_v15, 0.0 }
 0x89a   :  { %v2238_v40 = vadd.f32 %v4853_v47, %v2237_v37  ;;  %v2361_v44 = vmax.f32 %v2235_v34, 0.0 }
 0x89b   :  { %v2364_v42 = vmax.f32 %v2246_v36, 0.0 }
 0x89c   :  { %v2362_v45 = vmax.f32 %v2238_v40, 0.0 }
 0x89d   :  { %v2394_v48 = vpack.c.bf16 %v2364_v42, %v2363_v41 }
 0x89e   :  { %v2393_v49 = vpack.c.bf16 %v2362_v45, %v2361_v44 }
 0x8a0   :  { %3884 = vmatprep.mubr.bf16.mxu1 %v2393_v49 }
 0x8a1   :  { %3885 = vmatmul.mubr.bf16.vlgmr.msra.gmra.mrb[160].mxu1 %v2394_v48 }
 0x8a6   :  { %v3842_v51 = vpop.f32.mrb[132].mxu1 }
 0x8a7   :  { %v2259_v32 = vadd.f32 %v3842_v51, %v4853_v47  ;;  %v2250_v31 = vpop.f32.mrb[133].mxu1 }
 0x8a8   :  { %v2251_v52 = vadd.f32 %v4853_v47, %v2250_v31  ;;  %v3843_v53 = vpop.f32.mrb[134].mxu1 }
 0x8a9   :  { %v2262_v54 = vadd.f32 %v3843_v53, %v4853_v47  ;;  %v2253_v14 = vpop.f32.mrb[135].mxu1  ;;  %v2367_v7 = vmax.f32 %v2259_v32, 0.0 }
 0x8aa   :  { %v2254_v6 = vadd.f32 %v4853_v47, %v2253_v14  ;;  %v2365_v22 = vmax.f32 %v2251_v52, 0.0 }
 0x8ab   :  { %v2368_v8 = vmax.f32 %v2262_v54, 0.0 }
 0x8ac   :  { %v2366_v9 = vmax.f32 %v2254_v6, 0.0 }
 0x8ad   :  { %v2396_v10 = vpack.c.bf16 %v2368_v8, %v2367_v7 }
 0x8ae   :  { %v2395_v11 = vpack.c.bf16 %v2366_v9, %v2365_v22 }
 0x8b0   :  { %3888 = vmatprep.mubr.bf16.mxu1 %v2395_v11 }
 0x8b1   :  { %3889 = vmatmul.mubr.bf16.gmra.mrb[164].mxu1 %v2396_v10 }
 0x8b6   :  { %v3846_v39 = vpop.f32.mrb[136].mxu1 }
 0x8b7   :  { %v2275_v16 = vadd.f32 %v3846_v39, %v4853_v47  ;;  %v2266_v38 = vpop.f32.mrb[137].mxu1 }
 0x8b8   :  { %v2267_v17 = vadd.f32 %v4853_v47, %v2266_v38  ;;  %v3847_v18 = vpop.f32.mrb[138].mxu1 }
 0x8b9   :  { %v2278_v29 = vadd.f32 %v3847_v18, %v4853_v47  ;;  %v2269_v19 = vpop.f32.mrb[139].mxu1  ;;  %v2371_v4 = vmax.f32 %v2275_v16, 0.0 }
 0x8ba   :  { %v2270_v23 = vadd.f32 %v4853_v47, %v2269_v19  ;;  %v2369_v25 = vmax.f32 %v2267_v17, 0.0 }
 0x8bb   :  { %v2372_v24 = vmax.f32 %v2278_v29, 0.0 }
 0x8bc   :  { %v2370_v26 = vmax.f32 %v2270_v23, 0.0 }
 0x8bd   :  { %v2398_v27 = vpack.c.bf16 %v2372_v24, %v2371_v4 }
 0x8be   :  { %v2397_v28 = vpack.c.bf16 %v2370_v26, %v2369_v25 }
 0x8c0   :  { %3892 = vmatprep.mubr.bf16.mxu1 %v2397_v28 }
 0x8c1   :  { %3893 = vmatmul.mubr.bf16.gmra.mrb[168].mxu1 %v2398_v27 }
 0x8c6   :  { %v3850_v5 = vpop.f32.mrb[140].mxu1 }
 0x8c7   :  { %v2291_v63 = vadd.f32 %v3850_v5, %v4853_v47  ;;  %v2282_v55 = vpop.f32.mrb[141].mxu1 }
 0x8c8   :  { %v2283_v43 = vadd.f32 %v4853_v47, %v2282_v55  ;;  %v3851_v62 = vpop.f32.mrb[142].mxu1 }
 0x8c9   :  { %v2294_v30 = vadd.f32 %v3851_v62, %v4853_v47  ;;  %v2285_v2 = vpop.f32.mrb[143].mxu1  ;;  %v2375_v13 = vmax.f32 %v2291_v63, 0.0 }
 0x8ca   :  { %v2286_v56 = vadd.f32 %v4853_v47, %v2285_v2  ;;  %v2373_v12 = vmax.f32 %v2283_v43, 0.0 }
 0x8cb   :  { %v2376_v57 = vmax.f32 %v2294_v30, 0.0 }
 0x8cc   :  { %v2374_v58 = vmax.f32 %v2286_v56, 0.0  ;;  %v4887_v56 = vld [vmem:[#allocation11 + $0x2] ss:$0 sm:$0xff] }
 0x8cd   :  { %v2400_v59 = vpack.c.bf16 %v2376_v57, %v2375_v13  ;;  %v4892_v13 = vld [vmem:[%s4999_s6] sm:$0xff] }
 0x8ce   :  { %v2399_v60 = vpack.c.bf16 %v2374_v58, %v2373_v12  ;;  %v3089_v57 = vcombine.high %v4892_v13, %v4892_v13 }
 0x8d0   :  { %3896 = vmatprep.mubr.bf16.mxu1 %v2399_v60  ;;  %2731 = vmatprep.mubr.bf16.mxu0 %v3089_v57 }
 0x8d1   :  { %3897 = vmatmul.mubr.bf16.gmra.mrb[172].mxu1 %v2400_v59 }
 0x8d6   :  { %v3854_v61 = vpop.f32.mrb[144].mxu1 }
 0x8d7   :  { %v2307_v0 = vadd.f32 %v3854_v61, %v4853_v47  ;;  %v2298_v1 = vpop.f32.mrb[145].mxu1  ;;  %v4087_v61 = vld [vmem:[#allocation13] sm:$0xff]  }
 0x8d8   :  { %v2299_v3 = vadd.f32 %v4853_v47, %v2298_v1  ;;  %v3855_v20 = vpop.f32.mrb[146].mxu1 }
 0x8d9   :  { %v2310_v21 = vadd.f32 %v3855_v20, %v4853_v47  ;;  %v2301_v46 = vpop.f32.mrb[147].mxu1  ;;  %v2379_v15 = vmax.f32 %v2307_v0, 0.0 }
 0x8da   :  { %v2302_v50 = vadd.f32 %v4853_v47, %v2301_v46  ;;  %v2377_v34 = vmax.f32 %v2299_v3, 0.0  ;;  %v4359_v3 = vmov 0.0  }
 0x8db   :  { %v2380_v33 = vmax.f32 %v2310_v21, 0.0  ;;  %3916 = vmatprep.subr.bf16.mxu1 %v4359_v3  ;;  %v4088_v21 = vld [vmem:[#allocation13 + $0x8] sm:$0xff]  }
 0x8dc   :  { %v2378_v35 = vmax.f32 %v2302_v50, 0.0  ;;  %3917 = vmatpush3.bf16.msra.mxu1 %v4087_v61 }
 0x8dd   :  { %v2402_v36 = vpack.c.bf16 %v2380_v33, %v2379_v15  ;;  %3918 = vmatprep.subr.bf16.mxu1 %v4359_v3 }
 0x8de   :  { %v2401_v37 = vpack.c.bf16 %v2378_v35, %v2377_v34 }
 0x8e0   :  { %3900 = vmatprep.mubr.bf16.mxu1 %v2401_v37  ;;  %3919 = vmatpush3.bf16.msra.mxu1 %v4088_v21  ;;  %v4090_v37 = vld [vmem:[#allocation13 + $0x18] sm:$0xff]  }
 0x8e1   :  { %3901 = vmatmul.mubr.bf16.gmra.mrb[176].mxu1 %v2402_v36  ;;  %v4089_v36 = vld [vmem:[#allocation13 + $0x10] sm:$0xff]   ;;  %3920 = vmatprep.subr.bf16.mxu1 %v4359_v3 }
 0x8e4   :  { %3921 = vmatpush3.bf16.msra.mxu1 %v4089_v36 }
 0x8e5   :  { %3922 = vmatprep.subr.bf16.mxu1 %v4359_v3 }
 0x8e6   :  { %v3858_v40 = vpop.f32.mrb[148].mxu1 }
 0x8e7   :  { %v2323_v41 = vadd.f32 %v3858_v40, %v4853_v47  ;;  %v2314_v42 = vpop.f32.mrb[149].mxu1 }
 0x8e8   :  { %v2315_v44 = vadd.f32 %v4853_v47, %v2314_v42  ;;  %v3859_v45 = vpop.f32.mrb[150].mxu1  ;;  %3923 = vmatpush3.bf16.msra.mxu1 %v4090_v37 }
 0x8e9   :  { %v2326_v48 = vadd.f32 %v3859_v45, %v4853_v47  ;;  %v2317_v49 = vpop.f32.mrb[151].mxu1  ;;  %v2383_v32 = vmax.f32 %v2323_v41, 0.0  ;;  %v4091_v41 = vld [vmem:[#allocation13 + $0x20] sm:$0xff]   ;;  %3924 = vmatprep.subr.bf16.mxu1 %v4359_v3 }
 0x8ea   :  { %v2318_v51 = vadd.f32 %v4853_v47, %v2317_v49  ;;  %v2381_v52 = vmax.f32 %v2315_v44, 0.0 }
 0x8eb   :  { %v2384_v31 = vmax.f32 %v2326_v48, 0.0 }
 0x8ec   :  { %v2382_v53 = vmax.f32 %v2318_v51, 0.0  ;;  %3925 = vmatpush3.bf16.msra.mxu1 %v4091_v41 }
 0x8ed   :  { %v2404_v54 = vpack.c.bf16 %v2384_v31, %v2383_v32  ;;  %v4092_v31 = vld [vmem:[#allocation13 + $0x28] sm:$0xff]   ;;  %3926 = vmatprep.subr.bf16.mxu1 %v4359_v3 }
 0x8ee   :  { %v2403_v14 = vpack.c.bf16 %v2382_v53, %v2381_v52 }
 0x8f0   :  { %3904 = vmatprep.mubr.bf16.mxu1 %v2403_v14  ;;  %3927 = vmatpush3.bf16.msra.mxu1 %v4092_v31 }
 0x8f1   :  { %3905 = vmatmul.mubr.bf16.gmra.mrb[180].mxu1 %v2404_v54  ;;  %3928 = vmatprep.subr.bf16.mxu1 %v4359_v3 }
 0x8f6   :  { %v3862_v6 = vpop.f32.mrb[152].mxu1 }
 0x8f7   :  { %v2339_v7 = vadd.f32 %v3862_v6, %v4853_v47  ;;  %v2330_v8 = vpop.f32.mrb[153].mxu1 }
 0x8f8   :  { %v2331_v22 = vadd.f32 %v4853_v47, %v2330_v8  ;;  %v3863_v9 = vpop.f32.mrb[154].mxu1  ;;  %v4093_v8 = vld [vmem:[#allocation13 + $0x30] sm:$0xff]  }
 0x8f9   :  { %v2342_v10 = vadd.f32 %v3863_v9, %v4853_v47  ;;  %v2333_v11 = vpop.f32.mrb[155].mxu1  ;;  %v2387_v16 = vmax.f32 %v2339_v7, 0.0  ;;  %3929 = vmatpush3.bf16.msra.mxu1 %v4093_v8 }
 0x8fa   :  { %v2334_v39 = vadd.f32 %v4853_v47, %v2333_v11  ;;  %v2385_v17 = vmax.f32 %v2331_v22, 0.0  ;;  %3930 = vmatprep.subr.bf16.mxu1 %v4359_v3 }
 0x8fb   :  { %v2388_v38 = vmax.f32 %v2342_v10, 0.0 }
 0x8fc   :  { %v2386_v18 = vmax.f32 %v2334_v39, 0.0 }
 0x8fd   :  { %v2406_v29 = vpack.c.bf16 %v2388_v38, %v2387_v16 }
 0x8fe   :  { %v2405_v19 = vpack.c.bf16 %v2386_v18, %v2385_v17 }
 0x900   :  { %3908 = vmatprep.mubr.bf16.mxu1 %v2405_v19 }
 0x901   :  { %3909 = vmatmul.mubr.bf16.gmra.mrb[184].mxu1 %v2406_v29 }
 0x906   :  { %v3866_v23 = vpop.f32.mrb[156].mxu1 }
 0x907   :  { %v2355_v4 = vadd.f32 %v3866_v23, %v4853_v47  ;;  %v2346_v24 = vpop.f32.mrb[157].mxu1 }
 0x908   :  { %v2347_v25 = vadd.f32 %v4853_v47, %v2346_v24  ;;  %v3867_v26 = vpop.f32.mrb[158].mxu1 }
 0x909   :  { %v2358_v27 = vadd.f32 %v3867_v26, %v4853_v47  ;;  %v2349_v28 = vpop.f32.mrb[159].mxu1  ;;  %v2391_v63 = vmax.f32 %v2355_v4, 0.0 }
 0x90a   :  { %v2350_v5 = vadd.f32 %v4853_v47, %v2349_v28  ;;  %v2389_v43 = vmax.f32 %v2347_v25, 0.0 }
 0x90b   :  { %v2392_v55 = vmax.f32 %v2358_v27, 0.0 }
 0x90c   :  { %v2390_v62 = vmax.f32 %v2350_v5, 0.0 }
 0x90d   :  { %v2408_v30 = vpack.c.bf16 %v2392_v55, %v2391_v63 }
 0x90e   :  { %v2407_v2 = vpack.c.bf16 %v2390_v62, %v2389_v43 }
 0x910   :  { %3912 = vmatprep.mubr.bf16.mxu1 %v2407_v2 }
 0x911   :  { %3913 = vmatmul.mubr.bf16.gmra.mrb[188].mxu1 %v2408_v30 }
 0x912   :  { %3932 = vmatprep.mubr.msk.bf16.mxu1 %vm4360_vm0, %v4359_v3 }
 0x974   :  { %v3886_v12 = vpop.f32.mrb[160].mxu1 }
 0x975   :  { %v2525_v47 = vadd.f32 %v3886_v12, %v4887_v56  ;;  %v2516_v58 = vpop.f32.mrb[161].mxu1 }
 0x976   :  { %v2517_v59 = vadd.f32 %v4887_v56, %v2516_v58  ;;  %v3887_v60 = vpop.f32.mrb[162].mxu1 }
 0x977   :  { %v2528_v0 = vadd.f32 %v3887_v60, %v4887_v56  ;;  %v2519_v1 = vpop.f32.mrb[163].mxu1  ;;  %v2645_v46 = vmax.f32 %v2525_v47, 0.0 }
 0x978   :  { %v2520_v20 = vadd.f32 %v4887_v56, %v2519_v1  ;;  %v2643_v15 = vmax.f32 %v2517_v59, 0.0 }
 0x979   :  { %v2646_v50 = vmax.f32 %v2528_v0, 0.0 }
 0x97a   :  { %v2644_v33 = vmax.f32 %v2520_v20, 0.0 }
 0x97b   :  { %v4902_v34 = vpack.c.bf16 %v2646_v50, %v2645_v46 }
 0x97c   :  { %v4904_v35 = vpack.c.bf16 %v2644_v33, %v2643_v15 }
 0x984   :  { %v3890_v40 = vpop.f32.mrb[164].mxu1 }
 0x985   :  { %v2541_v42 = vadd.f32 %v3890_v40, %v4887_v56  ;;  %v2532_v44 = vpop.f32.mrb[165].mxu1 }
 0x986   :  { %v2533_v45 = vadd.f32 %v4887_v56, %v2532_v44  ;;  %v3891_v48 = vpop.f32.mrb[166].mxu1 }
 0x987   :  { %v2544_v49 = vadd.f32 %v3891_v48, %v4887_v56  ;;  %v2535_v51 = vpop.f32.mrb[167].mxu1  ;;  %v2649_v52 = vmax.f32 %v2541_v42, 0.0 }
 0x988   :  { %v2536_v32 = vadd.f32 %v4887_v56, %v2535_v51  ;;  %v2647_v54 = vmax.f32 %v2533_v45, 0.0 }
 0x989   :  { %v2650_v53 = vmax.f32 %v2544_v49, 0.0 }
 0x98a   :  { %v2648_v14 = vmax.f32 %v2536_v32, 0.0 }
 0x98b   :  { %v4914_v6 = vpack.c.bf16 %v2650_v53, %v2649_v52 }
 0x98c   :  { %v4916_v7 = vpack.c.bf16 %v2648_v14, %v2647_v54 }
 0x994   :  { %v3894_v22 = vpop.f32.mrb[168].mxu1 }
 0x995   :  { %v2557_v9 = vadd.f32 %v3894_v22, %v4887_v56  ;;  %v2548_v10 = vpop.f32.mrb[169].mxu1 }
 0x996   :  { %v2549_v11 = vadd.f32 %v4887_v56, %v2548_v10  ;;  %v3895_v39 = vpop.f32.mrb[170].mxu1 }
 0x997   :  { %v2560_v16 = vadd.f32 %v3895_v39, %v4887_v56  ;;  %v2551_v38 = vpop.f32.mrb[171].mxu1  ;;  %v2653_v18 = vmax.f32 %v2557_v9, 0.0 }
 0x998   :  { %v2552_v17 = vadd.f32 %v4887_v56, %v2551_v38  ;;  %v2651_v19 = vmax.f32 %v2549_v11, 0.0 }
 0x999   :  { %v2654_v29 = vmax.f32 %v2560_v16, 0.0 }
 0x99a   :  { %v2652_v23 = vmax.f32 %v2552_v17, 0.0 }
 0x99b   :  { %v4924_v4 = vpack.c.bf16 %v2654_v29, %v2653_v18 }
 0x99c   :  { %v4926_v24 = vpack.c.bf16 %v2652_v23, %v2651_v19 }
 0x9a4   :  { %v3898_v25 = vpop.f32.mrb[172].mxu1 }
 0x9a5   :  { %v2573_v26 = vadd.f32 %v3898_v25, %v4887_v56  ;;  %v2564_v27 = vpop.f32.mrb[173].mxu1 }
 0x9a6   :  { %v2565_v28 = vadd.f32 %v4887_v56, %v2564_v27  ;;  %v3899_v5 = vpop.f32.mrb[174].mxu1 }
 0x9a7   :  { %v2576_v63 = vadd.f32 %v3899_v5, %v4887_v56  ;;  %v2567_v55 = vpop.f32.mrb[175].mxu1  ;;  %v2657_v62 = vmax.f32 %v2573_v26, 0.0 }
 0x9a8   :  { %v2568_v43 = vadd.f32 %v4887_v56, %v2567_v55  ;;  %v2655_v2 = vmax.f32 %v2565_v28, 0.0 }
 0x9a9   :  { %v2658_v30 = vmax.f32 %v2576_v63, 0.0 }
 0x9aa   :  { %v2656_v57 = vmax.f32 %v2568_v43, 0.0 }
 0x9ab   :  { %v4932_v12 = vpack.c.bf16 %v2658_v30, %v2657_v62 }
 0x9ac   :  { %v4934_v47 = vpack.c.bf16 %v2656_v57, %v2655_v2  ;;  %v4094_v2 = vld [vmem:[#allocation13 + $0x38] sm:$0xff]   ;;  %v4096_v57 = vld [vmem:[#allocation14 + $0x8] sm:$0xff]  }
 0x9ad   :  { %3931 = vmatpush3.bf16.msra.mxu1 %v4094_v2 }
 0x9b4   :  { %v3902_v58 = vpop.f32.mrb[176].mxu1 }
 0x9b5   :  { %v2589_v59 = vadd.f32 %v3902_v58, %v4887_v56  ;;  %v2580_v60 = vpop.f32.mrb[177].mxu1  ;;  %v4100_v58 = vld [vmem:[#allocation14 + $0x28] sm:$0xff]  }
 0x9b6   :  { %v2581_v61 = vadd.f32 %v4887_v56, %v2580_v60  ;;  %v3903_v0 = vpop.f32.mrb[178].mxu1 }
 0x9b7   :  { %v2592_v1 = vadd.f32 %v3903_v0, %v4887_v56  ;;  %v2583_v20 = vpop.f32.mrb[179].mxu1  ;;  %v2661_v46 = vmax.f32 %v2589_v59, 0.0 }
 0x9b8   :  { %v2584_v21 = vadd.f32 %v4887_v56, %v2583_v20  ;;  %v2659_v15 = vmax.f32 %v2581_v61, 0.0  ;;  %v2739_v61 = vld [vmem:[%s5000_s7] sm:$0xff] }
 0x9b9   :  { %v2662_v50 = vmax.f32 %v2592_v1, 0.0 }
 0x9ba   :  { %v2660_v33 = vmax.f32 %v2584_v21, 0.0 }
 0x9bb   :  { %v2684_v36 = vpack.c.bf16 %v2662_v50, %v2661_v46  ;;  %v4101_v50 = vld [vmem:[#allocation14 + $0x30] sm:$0xff]  }
 0x9bc   :  { %v2683_v37 = vpack.c.bf16 %v2660_v33, %v2659_v15  ;;  %v4102_v15 = vld [vmem:[#allocation14 + $0x38] sm:$0xff]  }
 0x9bd   :  { %v3090_v33 = vld [vmem:[%s5002_s9] ss:$0 sm:$0xff]  ;;  %s4311_s9 = scalar_lea.vmem %s2974_s20, 128 }
 0x9be   :  { %3588 = vmatprep.subr.bf16.mxu0 %v2683_v37  ;;  %p4312_p8 = scmp.ne.s32.totalorder %s2974_s20, %s4311_s9  ;;  %p4317_p10 = scmp.lt.s32.totalorder %s4311_s9, %s4311_s9 }
 0x9bf   :  { %3589 = vmatpush3.bf16.msra.mxu0 %v4904_v35 }
 0x9c0   :  { %3590 = vmatprep.subr.bf16.mxu0 %v2684_v36  ;;  %p4318_p11 = por %p4317_p10, %p4316_p9 }
 0x9c2   :  { %p4319_p12 = pnand %p4318_p11, %p4312_p8 }
 0x9c3   :  { %3591 = vmatpush3.bf16.msra.mxu0 %v4902_v34 }
 0x9c4   :  { %v3906_v40 = vpop.f32.mrb[180].mxu1 }
 0x9c5   :  { %v2605_v41 = vadd.f32 %v3906_v40, %v4887_v56  ;;  %v2596_v42 = vpop.f32.mrb[181].mxu1 }
 0x9c6   :  { %v2597_v44 = vadd.f32 %v4887_v56, %v2596_v42  ;;  %v3907_v45 = vpop.f32.mrb[182].mxu1 }
 0x9c7   :  { %v2608_v48 = vadd.f32 %v3907_v45, %v4887_v56  ;;  %v2599_v49 = vpop.f32.mrb[183].mxu1  ;;  %v2665_v32 = vmax.f32 %v2605_v41, 0.0 }
 0x9c8   :  { %v2600_v51 = vadd.f32 %v4887_v56, %v2599_v49  ;;  %v2663_v52 = vmax.f32 %v2597_v44, 0.0 }
 0x9c9   :  { %v2666_v31 = vmax.f32 %v2608_v48, 0.0  ;;  %v3099_v48 = vld [vmem:[%s5004_s11] ss:$0 sm:$0xff] }
 0x9ca   :  { %v2664_v53 = vmax.f32 %v2600_v51, 0.0 }
 0x9cb   :  { %v2686_v35 = vpack.c.bf16 %v2666_v31, %v2665_v32 }
 0x9cc   :  { %v2685_v54 = vpack.c.bf16 %v2664_v53, %v2663_v52 }
 0x9ce   :  { %3592 = vmatprep.subr.bf16.mxu0 %v2685_v54 }
 0x9cf   :  { %3593 = vmatpush3.bf16.msra.mxu0 %v4916_v7 }
 0x9d0   :  { %3594 = vmatprep.subr.bf16.mxu0 %v2686_v35 }
 0x9d3   :  { %3595 = vmatpush3.bf16.msra.mxu0 %v4914_v6 }
 0x9d4   :  { %v3910_v34 = vpop.f32.mrb[184].mxu1 }
 0x9d5   :  { %v2621_v14 = vadd.f32 %v3910_v34, %v4887_v56  ;;  %v2612_v8 = vpop.f32.mrb[185].mxu1 }
 0x9d6   :  { %v2613_v22 = vadd.f32 %v4887_v56, %v2612_v8  ;;  %v3911_v9 = vpop.f32.mrb[186].mxu1 }
 0x9d7   :  { %v2624_v10 = vadd.f32 %v3911_v9, %v4887_v56  ;;  %v2615_v11 = vpop.f32.mrb[187].mxu1  ;;  %v2669_v16 = vmax.f32 %v2621_v14, 0.0 }
 0x9d8   :  { %v2616_v39 = vadd.f32 %v4887_v56, %v2615_v11  ;;  %v2667_v17 = vmax.f32 %v2613_v22, 0.0 }
 0x9d9   :  { %v2670_v38 = vmax.f32 %v2624_v10, 0.0 }
 0x9da   :  { %v2668_v18 = vmax.f32 %v2616_v39, 0.0 }
 0x9db   :  { %v2688_v7 = vpack.c.bf16 %v2670_v38, %v2669_v16 }
 0x9dc   :  { %v2687_v29 = vpack.c.bf16 %v2668_v18, %v2667_v17 }
 0x9de   :  { %3596 = vmatprep.subr.bf16.mxu0 %v2687_v29 }
 0x9df   :  { %3597 = vmatpush3.bf16.msra.mxu0 %v4926_v24 }
 0x9e0   :  { %3598 = vmatprep.subr.bf16.mxu0 %v2688_v7 }
 0x9e3   :  { %3599 = vmatpush3.bf16.msra.mxu0 %v4924_v4  ;;  %v3088_v4 = vcombine.low %v4892_v13, %v4892_v13  ;;  %v4098_v13 = vld [vmem:[#allocation14 + $0x18] sm:$0xff]  }
 0x9e4   :  { %v3914_v6 = vpop.f32.mrb[188].mxu1 }
 0x9e5   :  { %v2637_v19 = vadd.f32 %v3914_v6, %v4887_v56  ;;  %v2628_v23 = vpop.f32.mrb[189].mxu1 }
 0x9e6   :  { %v2629_v25 = vadd.f32 %v4887_v56, %v2628_v23  ;;  %v3915_v26 = vpop.f32.mrb[190].mxu1 }
 0x9e7   :  { %v2640_v27 = vadd.f32 %v3915_v26, %v4887_v56  ;;  %v2631_v28 = vpop.f32.mrb[191].mxu1  ;;  %v2673_v63 = vmax.f32 %v2637_v19, 0.0 }
 0x9e8   :  { %v2632_v5 = vadd.f32 %v4887_v56, %v2631_v28  ;;  %v2671_v43 = vmax.f32 %v2629_v25, 0.0  ;;  %v4095_v56 = vld [vmem:[#allocation14] sm:$0xff]  }
 0x9e9   :  { %v2674_v55 = vmax.f32 %v2640_v27, 0.0 }
 0x9ea   :  { %v2672_v62 = vmax.f32 %v2632_v5, 0.0 }
 0x9eb   :  { %v2690_v24 = vpack.c.bf16 %v2674_v55, %v2673_v63 }
 0x9ec   :  { %v2689_v30 = vpack.c.bf16 %v2672_v62, %v2671_v43 }
 0x9ee   :  { %3600 = vmatprep.subr.bf16.mxu0 %v2689_v30 }
 0x9ef   :  { %3601 = vmatpush3.bf16.msra.mxu0 %v4934_v47  ;;  %v4097_v47 = vld [vmem:[#allocation14 + $0x10] sm:$0xff]  }
 0x9f0   :  { %3602 = vmatprep.subr.bf16.mxu0 %v2690_v24 }
 0x9f3   :  { %3603 = vmatpush3.bf16.msra.mxu0 %v4932_v12  ;;  %v4099_v12 = vld [vmem:[#allocation14 + $0x20] sm:$0xff]  }
 0x9f4   :  { %3936 = vmatprep.subr.bf16.mxu0 %v4359_v3 }
 0x9f6   :  { %2732 = vmatmul.mubr.bf16.vlgmr.msra.gmra.mrb[192].mxu0 %v3088_v4 }
 0x9f7   :  { %3952 = vmatprep.mubr.msk.bf16.mxu0 %vm4360_vm0, %v4359_v3  ;;  %3937 = vmatpush3.bf16.msra.mxu0 %v4095_v56 }
 0x9f8   :  { %3938 = vmatprep.subr.bf16.mxu0 %v4359_v3 }
 0x9fb   :  { %3939 = vmatpush3.bf16.msra.mxu0 %v4096_v57 }
 0x9fc   :  { %3940 = vmatprep.subr.bf16.mxu0 %v4359_v3 }
 0x9ff   :  { %3941 = vmatpush3.bf16.msra.mxu0 %v4097_v47 }
 0xa00   :  { %3942 = vmatprep.subr.bf16.mxu0 %v4359_v3 }
 0xa03   :  { %3943 = vmatpush3.bf16.msra.mxu0 %v4098_v13 }
 0xa04   :  { %3944 = vmatprep.subr.bf16.mxu0 %v4359_v3 }
 0xa07   :  { %3945 = vmatpush3.bf16.msra.mxu0 %v4099_v12 }
 0xa08   :  { %3946 = vmatprep.subr.bf16.mxu0 %v4359_v3 }
 0xa0b   :  { %3947 = vmatpush3.bf16.msra.mxu0 %v4100_v58 }
 0xa0c   :  { %3948 = vmatprep.subr.bf16.mxu0 %v4359_v3 }
 0xa0f   :  { %3949 = vmatpush3.bf16.msra.mxu0 %v4101_v50 }
 0xa10   :  { %3950 = vmatprep.subr.bf16.mxu0 %v4359_v3 }
 0xa13   :  { %3951 = vmatpush3.bf16.msra.mxu0 %v4102_v15 }
 0xac9   :  { %v3604_v59 = vpop.f32.mrb[192].mxu0 }
 0xaca   :  { %v3605_v60 = vpop.f32.mrb[193].mxu0 }
 0xacb   :  { %v3606_v0 = vadd.f32 %v3605_v60, %v3604_v59  ;;  %v3607_v1 = vpop.f32.mrb[194].mxu0 }
 0xacc   :  { %v3608_v20 = vpop.f32.mrb[195].mxu0 }
 0xacd   :  { %v2740_v21 = vmul.f32 %v3606_v0, %v2739_v61 }
 0xacf   :  { %v2741_v46 = vpack.c.bf16 %v2740_v21, %v2740_v21 }
 0xad1   :  { %3933 = vmatmul.mubr.bf16.vlgmr.msra.gmra.mrb[192].mxu1 %v2741_v46 }
 0xba4   :  { %v2847_v36 = vpop.f32.mrb[192].mxu1 }
 0xba5   :  { %v2848_v37 = vadd.f32 %v3090_v33, %v2847_v36  ;;  %v3934_v40 = vpop.f32.mrb[193].mxu1 }
 0xba6   :  { %v2850_v41 = vpop.f32.mrb[194].mxu1 }
 0xba7   :  { %v2853_v42 = vmax.f32 %v2848_v37, 0.0  ;;  %v3935_v44 = vpop.f32.mrb[195].mxu1 }
 0xba9   :  { %v2854_v45 = vpack.c.bf16 %v2853_v42, %v2853_v42 }
 0xbab   :  { %3953 = vmatmul.mubr.bf16.vlgmr.msra.gmra.mrb[196].mxu0 %v2854_v45 }
 0xc7e   :  { %v2960_v3 = vpop.f32.mrb[196].mxu0 }
 0xc7f   :  { %v2961_v49 = vadd.f32 %v3099_v48, %v2960_v3  ;;  %v3954_v51 = vpop.f32.mrb[197].mxu0 }
 0xc80   :  { %v2963_v32 = vpop.f32.mrb[198].mxu0 }
 0xc81   :  { %2966 = vst [vmem:[#allocation16] sm:$0xff] %v2961_v49  ;;  %v3955_v31 = vpop.f32.mrb[199].mxu0 }
 0xc82   :  { %4322 = shalt.err (!%p4319_p12)
}
 0xc83   :  { %s4323_s11 = scalar_lea.hbm %s5005_s12, 128 }
 0xc84   :  { %p4324_p13 = scmp.ne.s32.totalorder %s5005_s12, %s4323_s11  ;;  %p4327_p0 = scmp.lt.u32.totalorder %s4323_s11, %s5005_s12 }
 0xc86   :  { %p4329_p1 = pnand %p4327_p0, %p4324_p13 }
 0xc88   :  { %4332 = shalt.err (!%p4329_p1)
}
 0xc89   :  { %2976 = dma.vmem_to_hbm [thread:$0]  %s2974_s20, 128, %s5005_s12, [#allocation4]  }
 0xc8a   :  { %4343 = dma.done.wait [#allocation4], 128  }
 0xc8b   :  { %4344 = vsyncadd [#allocation4], 4294967168 }
 0xc8c   :  { %2980 = vsyncpa [#allocation3], 1 }
 0xc8d   :  { %2981 = vsyncpa [#allocation6], 1 }
 0xc8e   :  { %2982 = vsyncpa [#allocation9], 1 }
 0xc8f   :  { %2983 = vsyncpa [#allocation12], 1 }
 0xc90   :  { %2984 = vsyncpa [#allocation15], 1 }
 0xc91   :  { %2985 = vsyncpa [#allocation4], 1 }

</bundles_post_ra>
